<compile_context>
chip_gen: v7x
topology: tpu7x:2x2x1
jax: 0.10.0
libtpu: 0.0.40
codegen_flags: <defaults>
</compile_context>

<pallas_src>
import jax
import jax.numpy as jnp
from jax.experimental import pallas as pl
from jax.experimental.pallas import tpu as pltpu

LANE = 128
SUBLANE = 8
IN_FEATURES = 28 * 28
N_CLASSES = 10


def _round_up(x, m):
    return (x + m - 1) // m * m


# --------------------------------------------------------------------------- #
# Kernel
# --------------------------------------------------------------------------- #
def mlp_kernel(x_ref,
               w1_ref, b1_ref,
               w2_ref, b2_ref,
               w3_ref, b3_ref,
               w4_ref, b4_ref,
               out_ref):
    # x tile arrives in the caller's dtype (f32 or bf16); MXU operands are bf16.
    x = x_ref[...].astype(jnp.bfloat16)                               # (TB, 784)

    h1 = jnp.tanh(
        jnp.dot(x, w1_ref[...], preferred_element_type=jnp.float32)
        + b1_ref[...])                                                # (TB, s1p) f32
    h2 = jnp.tanh(
        jnp.dot(h1.astype(jnp.bfloat16), w2_ref[...],
                preferred_element_type=jnp.float32)
        + b2_ref[...])                                                # (TB, s2p) f32
    h3 = jnp.tanh(
        jnp.dot(h2.astype(jnp.bfloat16), w3_ref[...],
                preferred_element_type=jnp.float32)
        + b3_ref[...])                                                # (TB, s3p) f32
    logits = (
        jnp.dot(h3.astype(jnp.bfloat16), w4_ref[...],
                preferred_element_type=jnp.float32)
        + b4_ref[...])                                                # (TB, 128) f32

    out_ref[...] = logits.astype(out_ref.dtype)                       # bf16 store


# --------------------------------------------------------------------------- #
# Parameter packing (one-time): pad lane dims to multiples of 128, weights bf16
# --------------------------------------------------------------------------- #
def pack_params(params):
    """params: 4 x (w (in,out) f32, b (1,out) f32) matching nn.Linear (transposed).
    Returns padded bf16 weights + padded f32 biases. Zero padding is exact:
    padded hidden units are tanh(0)=0 and padded logit lanes stay 0."""
    packed = []
    for idx, (w, b) in enumerate(params):
        fin, fout = w.shape
        fin_p = fin if idx == 0 else _round_up(fin, LANE)   # layer 1 keeps 784
        fout_p = _round_up(fout, LANE)
        wp = jnp.zeros((fin_p, fout_p), jnp.bfloat16)
        wp = wp.at[:fin, :fout].set(w.astype(jnp.bfloat16))
        bp = jnp.zeros((1, fout_p), jnp.float32)
        bp = bp.at[:, :fout].set(b.astype(jnp.float32))
        packed.append((wp, bp))
    return tuple(packed)


# --------------------------------------------------------------------------- #
# VMEM budgeting
# --------------------------------------------------------------------------- #
def _vmem_ceiling_bytes():
    """Per-generation VMEM request ceiling with headroom for Mosaic scratch."""
    try:
        cap = int(pltpu.get_tpu_info().vmem_capacity_bytes)
    except Exception:
        cap = 64 << 20                       # conservative (v7x-sized) default
    # Leave >= 12 MiB / >= 15% headroom: ~52 MiB on v7x, ~108 MiB on v5e/v6e.
    return max(32 << 20, min(cap - (12 << 20), cap * 85 // 100))


def _estimate_vmem_bytes(packed_params, tb, x_itemsize, n_out_p):
    def nbytes(a):
        return a.size * a.dtype.itemsize
    # Resident weights/biases: single-buffered.
    weight_bytes = sum(nbytes(t) for wb in packed_params for t in wb)
    # Double-buffered x and output tiles.
    io_bytes = 2 * tb * IN_FEATURES * x_itemsize + 2 * tb * n_out_p * 2
    # f32 intermediates + bf16 casts of x/h feeding the MXU.
    hidden_p = sum(w.shape[1] for w, _ in packed_params)
    inter_bytes = tb * hidden_p * (4 + 2) + tb * IN_FEATURES * 2
    return (weight_bytes + io_bytes + inter_bytes) * 5 // 4   # 25% margin


# --------------------------------------------------------------------------- #
# Forward wrapper
# --------------------------------------------------------------------------- #
def mnist_classifier_forward(img, packed_params, *, tile_b=256):
    """img: (B, 1, 28, 28) float32 or bfloat16 (NCHW). Returns (B, 10) float32."""
    B = img.shape[0]
    x = img.reshape(B, IN_FEATURES)          # == img.view(-1, 784); keeps dtype

    (w1, b1), (w2, b2), (w3, b3), (w4, b4) = packed_params
    n_out_p = w4.shape[1]                    # 128 (padded from 10)

    # Batch tiling: >= 2 grid steps when the batch allows it (v7x megacore),
    # tile a multiple of 8 (sublane), minimal padding waste.
    n_tiles = max(1, pl.cdiv(B, tile_b))
    if B > SUBLANE and n_tiles < 2:
        n_tiles = 2
    tb = _round_up(pl.cdiv(B, n_tiles), SUBLANE)
    B_pad = tb * n_tiles
    if B_pad != B:
        x = jnp.pad(x, ((0, B_pad - B), (0, 0)))

    vmem_limit = min(
        max(_estimate_vmem_bytes(packed_params, tb, x.dtype.itemsize, n_out_p),
            32 << 20),
        _vmem_ceiling_bytes())

    def build_in_specs(single_buffer_weights):
        def resident(arr):
            nd = arr.ndim
            idx = lambda i, _nd=nd: (0,) * _nd
            if single_buffer_weights:
                return pl.BlockSpec(arr.shape, idx, pipeline_mode=pl.Buffered(1))
            return pl.BlockSpec(arr.shape, idx)
        specs = [pl.BlockSpec((tb, IN_FEATURES), lambda i: (i, 0))]  # x: batch-tiled
        for w, b in packed_params:
            specs.append(resident(w))
            specs.append(resident(b))
        return specs

    def call(single_buffer_weights):
        return pl.pallas_call(
            mlp_kernel,
            out_shape=jax.ShapeDtypeStruct((B_pad, n_out_p), jnp.bfloat16),
            grid=(n_tiles,),
            in_specs=build_in_specs(single_buffer_weights),
            out_specs=pl.BlockSpec((tb, n_out_p), lambda i: (i, 0)),
            compiler_params=pltpu.CompilerParams(
                dimension_semantics=("parallel",),
                vmem_limit_bytes=vmem_limit,
            ),
        )(x, w1, b1, w2, b2, w3, b3, w4, b4)

    try:
        out = call(True)                     # single-buffered resident weights
    except Exception:
        out = call(False)                    # fallback: default double-buffering

    return out[:B, :N_CLASSES].astype(jnp.float32)


# --------------------------------------------------------------------------- #
# Deterministic PyTorch-style init and reference
# --------------------------------------------------------------------------- #
def init_linear_params(key, fan_in, fan_out):
    """nn.Linear default init: U(-1/sqrt(fan_in), +1/sqrt(fan_in)).
    Stored as (in, out) == torch weight (out, in) transposed."""
    kw, kb = jax.random.split(key)
    bound = 1.0 / jnp.sqrt(jnp.float32(fan_in))
    w = jax.random.uniform(kw, (fan_in, fan_out), jnp.float32, -bound, bound)
    b = jax.random.uniform(kb, (1, fan_out), jnp.float32, -bound, bound)
    return w, b


def make_params(key, size_1, size_2, size_3):
    k1, k2, k3, k4 = jax.random.split(key, 4)
    return (
        init_linear_params(k1, IN_FEATURES, size_1),
        init_linear_params(k2, size_1, size_2),
        init_linear_params(k3, size_2, size_3),
        init_linear_params(k4, size_3, 10),
    )


def reference_forward(img, params):
    x = img.reshape(img.shape[0], IN_FEATURES).astype(jnp.float32)
    (w1, b1), (w2, b2), (w3, b3), (w4, b4) = params
    h = jnp.tanh(x @ w1 + b1)
    h = jnp.tanh(h @ w2 + b2)
    h = jnp.tanh(h @ w3 + b3)
    return h @ w4 + b4


if __name__ == "__main__":
    key = jax.random.PRNGKey(0)
    k_img, k_img2, k_params = jax.random.split(key, 3)

    # Small, module-consistent shapes.
    size_1, size_2, size_3 = 64, 32, 32
    params = make_params(k_params, size_1, size_2, size_3)
    packed = pack_params(params)

    # Case 1: tiny batch (single grid step), f32 input path.
    batch = 8
    img = jax.random.normal(k_img, (batch, 1, 28, 28), jnp.float32)
    logits = mnist_classifier_forward(img, packed)
    jax.block_until_ready(logits)
    ref = reference_forward(img, params)
    assert logits.shape == (batch, N_CLASSES)
    err = float(jnp.max(jnp.abs(logits - ref)))
    assert jnp.allclose(logits, ref, atol=3e-2, rtol=3e-2), f"max err {err}"

    # Case 2: batch not a multiple of the tile (grid split into 2 steps +
    # padding), bf16 input path (as if the data pipeline stages bf16 images).
    batch2 = 200
    img2 = jax.random.normal(k_img2, (batch2, 1, 28, 28), jnp.float32
                             ).astype(jnp.bfloat16)
    logits2 = mnist_classifier_forward(img2, packed)
    jax.block_until_ready(logits2)
    ref2 = reference_forward(img2, params)        # reference sees same bf16 input
    assert logits2.shape == (batch2, N_CLASSES)
    err2 = float(jnp.max(jnp.abs(logits2 - ref2)))
    assert jnp.allclose(logits2, ref2, atol=3e-2, rtol=3e-2), f"max err {err2}"

    print("KERNEL_OK")
</pallas_src>

<mosaic_0001>
module attributes {stable_mosaic.version = 11 : i64} {
  func.func @mlp_kernel(%arg0: i32, %arg1: memref<8x784xf32, #tpu.memory_space<vmem>>, %arg2: memref<784x128xbf16, #tpu.memory_space<vmem>>, %arg3: memref<1x128xf32, #tpu.memory_space<vmem>>, %arg4: memref<128x128xbf16, #tpu.memory_space<vmem>>, %arg5: memref<1x128xf32, #tpu.memory_space<vmem>>, %arg6: memref<128x128xbf16, #tpu.memory_space<vmem>>, %arg7: memref<1x128xf32, #tpu.memory_space<vmem>>, %arg8: memref<128x128xbf16, #tpu.memory_space<vmem>>, %arg9: memref<1x128xf32, #tpu.memory_space<vmem>>, %arg10: memref<8x128xbf16, #tpu.memory_space<vmem>>) attributes {dimension_semantics = [#tpu.dimension_semantics<parallel>], iteration_bounds = array<i64: 1>, scalar_prefetch = 0 : i64, scratch_operands = 0 : i64, tpu.core_type = #tpu.core_type<tc>, window_params = [{transform_indices = @transform_0, window_bounds = array<i64: 8, 784>}, {pipeline_mode = #tpu.pipeline_mode<synchronous>, transform_indices = @transform_1, window_bounds = array<i64: 784, 128>}, {pipeline_mode = #tpu.pipeline_mode<synchronous>, transform_indices = @transform_2, window_bounds = array<i64: 1, 128>}, {pipeline_mode = #tpu.pipeline_mode<synchronous>, transform_indices = @transform_3, window_bounds = array<i64: 128, 128>}, {pipeline_mode = #tpu.pipeline_mode<synchronous>, transform_indices = @transform_4, window_bounds = array<i64: 1, 128>}, {pipeline_mode = #tpu.pipeline_mode<synchronous>, transform_indices = @transform_5, window_bounds = array<i64: 128, 128>}, {pipeline_mode = #tpu.pipeline_mode<synchronous>, transform_indices = @transform_6, window_bounds = array<i64: 1, 128>}, {pipeline_mode = #tpu.pipeline_mode<synchronous>, transform_indices = @transform_7, window_bounds = array<i64: 128, 128>}, {pipeline_mode = #tpu.pipeline_mode<synchronous>, transform_indices = @transform_8, window_bounds = array<i64: 1, 128>}, {transform_indices = @transform_9, window_bounds = array<i64: 8, 128>}]} {
    %c0 = arith.constant 0 : index
    %c0_0 = arith.constant 0 : index
    %0 = vector.load %arg1[%c0, %c0_0] : memref<8x784xf32, #tpu.memory_space<vmem>>, vector<8x784xf32>
    %1 = arith.truncf %0 : vector<8x784xf32> to vector<8x784xbf16>
    %c0_1 = arith.constant 0 : index
    %c0_2 = arith.constant 0 : index
    %2 = vector.load %arg2[%c0_1, %c0_2] : memref<784x128xbf16, #tpu.memory_space<vmem>>, vector<784x128xbf16>
    %cst = arith.constant dense<0.000000e+00> : vector<8x128xf32>
    %3 = tpu.matmul %1, %2, %cst {dimension_numbers = #tpu.dot_dimension_numbers<[1], [0], [0], [1], [0, 0, 1, 1], [], []>} : vector<8x784xbf16>, vector<784x128xbf16>, vector<8x128xf32> -> vector<8x128xf32>
    %c0_3 = arith.constant 0 : index
    %c0_4 = arith.constant 0 : index
    %4 = vector.load %arg3[%c0_3, %c0_4] : memref<1x128xf32, #tpu.memory_space<vmem>>, vector<1x128xf32>
    %5 = vector.broadcast %4 : vector<1x128xf32> to vector<8x128xf32>
    %6 = arith.addf %3, %5 : vector<8x128xf32>
    %7 = math.tanh %6 : vector<8x128xf32>
    %8 = arith.truncf %7 : vector<8x128xf32> to vector<8x128xbf16>
    %c0_5 = arith.constant 0 : index
    %c0_6 = arith.constant 0 : index
    %9 = vector.load %arg4[%c0_5, %c0_6] : memref<128x128xbf16, #tpu.memory_space<vmem>>, vector<128x128xbf16>
    %cst_7 = arith.constant dense<0.000000e+00> : vector<8x128xf32>
    %10 = tpu.matmul %8, %9, %cst_7 {dimension_numbers = #tpu.dot_dimension_numbers<[1], [0], [0], [1], [0, 0, 1, 1], [], []>} : vector<8x128xbf16>, vector<128x128xbf16>, vector<8x128xf32> -> vector<8x128xf32>
    %c0_8 = arith.constant 0 : index
    %c0_9 = arith.constant 0 : index
    %11 = vector.load %arg5[%c0_8, %c0_9] : memref<1x128xf32, #tpu.memory_space<vmem>>, vector<1x128xf32>
    %12 = vector.broadcast %11 : vector<1x128xf32> to vector<8x128xf32>
    %13 = arith.addf %10, %12 : vector<8x128xf32>
    %14 = math.tanh %13 : vector<8x128xf32>
    %15 = arith.truncf %14 : vector<8x128xf32> to vector<8x128xbf16>
    %c0_10 = arith.constant 0 : index
    %c0_11 = arith.constant 0 : index
    %16 = vector.load %arg6[%c0_10, %c0_11] : memref<128x128xbf16, #tpu.memory_space<vmem>>, vector<128x128xbf16>
    %cst_12 = arith.constant dense<0.000000e+00> : vector<8x128xf32>
    %17 = tpu.matmul %15, %16, %cst_12 {dimension_numbers = #tpu.dot_dimension_numbers<[1], [0], [0], [1], [0, 0, 1, 1], [], []>} : vector<8x128xbf16>, vector<128x128xbf16>, vector<8x128xf32> -> vector<8x128xf32>
    %c0_13 = arith.constant 0 : index
    %c0_14 = arith.constant 0 : index
    %18 = vector.load %arg7[%c0_13, %c0_14] : memref<1x128xf32, #tpu.memory_space<vmem>>, vector<1x128xf32>
    %19 = vector.broadcast %18 : vector<1x128xf32> to vector<8x128xf32>
    %20 = arith.addf %17, %19 : vector<8x128xf32>
    %21 = math.tanh %20 : vector<8x128xf32>
    %22 = arith.truncf %21 : vector<8x128xf32> to vector<8x128xbf16>
    %c0_15 = arith.constant 0 : index
    %c0_16 = arith.constant 0 : index
    %23 = vector.load %arg8[%c0_15, %c0_16] : memref<128x128xbf16, #tpu.memory_space<vmem>>, vector<128x128xbf16>
    %cst_17 = arith.constant dense<0.000000e+00> : vector<8x128xf32>
    %24 = tpu.matmul %22, %23, %cst_17 {dimension_numbers = #tpu.dot_dimension_numbers<[1], [0], [0], [1], [0, 0, 1, 1], [], []>} : vector<8x128xbf16>, vector<128x128xbf16>, vector<8x128xf32> -> vector<8x128xf32>
    %c0_18 = arith.constant 0 : index
    %c0_19 = arith.constant 0 : index
    %25 = vector.load %arg9[%c0_18, %c0_19] : memref<1x128xf32, #tpu.memory_space<vmem>>, vector<1x128xf32>
    %26 = vector.broadcast %25 : vector<1x128xf32> to vector<8x128xf32>
    %27 = arith.addf %24, %26 : vector<8x128xf32>
    %28 = arith.truncf %27 : vector<8x128xf32> to vector<8x128xbf16>
    %c0_20 = arith.constant 0 : index
    %c0_21 = arith.constant 0 : index
    %29 = vector.load %arg10[%c0_20, %c0_21] : memref<8x128xbf16, #tpu.memory_space<vmem>>, vector<8x128xbf16>
    tpu.vector_store %arg10[%c0_20, %c0_21], %28 {strides = array<i32>} : memref<8x128xbf16, #tpu.memory_space<vmem>>, vector<8x128xbf16>,
    return
  }
  func.func @transform_0(%arg0: i32) -> (i32, i32) {
    %c0_i32 = arith.constant 0 : i32
    %c0_i32_0 = arith.constant 0 : i32
    return %arg0, %c0_i32 : i32, i32
  }
  func.func @transform_1(%arg0: i32) -> (i32, i32) {
    %c0_i32 = arith.constant 0 : i32
    %c0_i32_0 = arith.constant 0 : i32
    %c0_i32_1 = arith.constant 0 : i32
    return %c0_i32, %c0_i32_0 : i32, i32
  }
  func.func @transform_2(%arg0: i32) -> (i32, i32) {
    %c0_i32 = arith.constant 0 : i32
    %c0_i32_0 = arith.constant 0 : i32
    %c0_i32_1 = arith.constant 0 : i32
    return %c0_i32, %c0_i32_0 : i32, i32
  }
  func.func @transform_3(%arg0: i32) -> (i32, i32) {
    %c0_i32 = arith.constant 0 : i32
    %c0_i32_0 = arith.constant 0 : i32
    %c0_i32_1 = arith.constant 0 : i32
    return %c0_i32, %c0_i32_0 : i32, i32
  }
  func.func @transform_4(%arg0: i32) -> (i32, i32) {
    %c0_i32 = arith.constant 0 : i32
    %c0_i32_0 = arith.constant 0 : i32
    %c0_i32_1 = arith.constant 0 : i32
    return %c0_i32, %c0_i32_0 : i32, i32
  }
  func.func @transform_5(%arg0: i32) -> (i32, i32) {
    %c0_i32 = arith.constant 0 : i32
    %c0_i32_0 = arith.constant 0 : i32
    %c0_i32_1 = arith.constant 0 : i32
    return %c0_i32, %c0_i32_0 : i32, i32
  }
  func.func @transform_6(%arg0: i32) -> (i32, i32) {
    %c0_i32 = arith.constant 0 : i32
    %c0_i32_0 = arith.constant 0 : i32
    %c0_i32_1 = arith.constant 0 : i32
    return %c0_i32, %c0_i32_0 : i32, i32
  }
  func.func @transform_7(%arg0: i32) -> (i32, i32) {
    %c0_i32 = arith.constant 0 : i32
    %c0_i32_0 = arith.constant 0 : i32
    %c0_i32_1 = arith.constant 0 : i32
    return %c0_i32, %c0_i32_0 : i32, i32
  }
  func.func @transform_8(%arg0: i32) -> (i32, i32) {
    %c0_i32 = arith.constant 0 : i32
    %c0_i32_0 = arith.constant 0 : i32
    %c0_i32_1 = arith.constant 0 : i32
    return %c0_i32, %c0_i32_0 : i32, i32
  }
  func.func @transform_9(%arg0: i32) -> (i32, i32) {
    %c0_i32 = arith.constant 0 : i32
    %c0_i32_0 = arith.constant 0 : i32
    return %arg0, %c0_i32 : i32, i32
  }
}

module attributes {stable_mosaic.version = 11 : i64} {
  func.func @mlp_kernel(%arg0: i32, %arg1: memref<8x784xf32, #tpu.memory_space<vmem>>, %arg2: memref<784x128xbf16, #tpu.memory_space<vmem>>, %arg3: memref<1x128xf32, #tpu.memory_space<vmem>>, %arg4: memref<128x128xbf16, #tpu.memory_space<vmem>>, %arg5: memref<1x128xf32, #tpu.memory_space<vmem>>, %arg6: memref<128x128xbf16, #tpu.memory_space<vmem>>, %arg7: memref<1x128xf32, #tpu.memory_space<vmem>>, %arg8: memref<128x128xbf16, #tpu.memory_space<vmem>>, %arg9: memref<1x128xf32, #tpu.memory_space<vmem>>, %arg10: memref<8x128xbf16, #tpu.memory_space<vmem>>) attributes {dimension_semantics = [#tpu.dimension_semantics<parallel>], iteration_bounds = array<i64: 1>, scalar_prefetch = 0 : i64, scratch_operands = 0 : i64, tpu.core_type = #tpu.core_type<tc>, window_params = [{transform_indices = @transform_0, window_bounds = array<i64: 8, 784>}, {pipeline_mode = #tpu.pipeline_mode<synchronous>, transform_indices = @transform_1, window_bounds = array<i64: 784, 128>}, {pipeline_mode = #tpu.pipeline_mode<synchronous>, transform_indices = @transform_2, window_bounds = array<i64: 1, 128>}, {pipeline_mode = #tpu.pipeline_mode<synchronous>, transform_indices = @transform_3, window_bounds = array<i64: 128, 128>}, {pipeline_mode = #tpu.pipeline_mode<synchronous>, transform_indices = @transform_4, window_bounds = array<i64: 1, 128>}, {pipeline_mode = #tpu.pipeline_mode<synchronous>, transform_indices = @transform_5, window_bounds = array<i64: 128, 128>}, {pipeline_mode = #tpu.pipeline_mode<synchronous>, transform_indices = @transform_6, window_bounds = array<i64: 1, 128>}, {pipeline_mode = #tpu.pipeline_mode<synchronous>, transform_indices = @transform_7, window_bounds = array<i64: 128, 128>}, {pipeline_mode = #tpu.pipeline_mode<synchronous>, transform_indices = @transform_8, window_bounds = array<i64: 1, 128>}, {transform_indices = @transform_9, window_bounds = array<i64: 8, 128>}]} {
    %c0 = arith.constant 0 : index
    %c0_0 = arith.constant 0 : index
    %0 = vector.load %arg1[%c0, %c0_0] : memref<8x784xf32, #tpu.memory_space<vmem>>, vector<8x784xf32>
    %1 = arith.truncf %0 : vector<8x784xf32> to vector<8x784xbf16>
    %c0_1 = arith.constant 0 : index
    %c0_2 = arith.constant 0 : index
    %2 = vector.load %arg2[%c0_1, %c0_2] : memref<784x128xbf16, #tpu.memory_space<vmem>>, vector<784x128xbf16>
    %cst = arith.constant dense<0.000000e+00> : vector<8x128xf32>
    %3 = tpu.matmul %1, %2, %cst {dimension_numbers = #tpu.dot_dimension_numbers<[1], [0], [0], [1], [0, 0, 1, 1], [], []>} : vector<8x784xbf16>, vector<784x128xbf16>, vector<8x128xf32> -> vector<8x128xf32>
    %c0_3 = arith.constant 0 : index
    %c0_4 = arith.constant 0 : index
    %4 = vector.load %arg3[%c0_3, %c0_4] : memref<1x128xf32, #tpu.memory_space<vmem>>, vector<1x128xf32>
    %5 = vector.broadcast %4 : vector<1x128xf32> to vector<8x128xf32>
    %6 = arith.addf %3, %5 : vector<8x128xf32>
    %7 = math.tanh %6 : vector<8x128xf32>
    %8 = arith.truncf %7 : vector<8x128xf32> to vector<8x128xbf16>
    %c0_5 = arith.constant 0 : index
    %c0_6 = arith.constant 0 : index
    %9 = vector.load %arg4[%c0_5, %c0_6] : memref<128x128xbf16, #tpu.memory_space<vmem>>, vector<128x128xbf16>
    %cst_7 = arith.constant dense<0.000000e+00> : vector<8x128xf32>
    %10 = tpu.matmul %8, %9, %cst_7 {dimension_numbers = #tpu.dot_dimension_numbers<[1], [0], [0], [1], [0, 0, 1, 1], [], []>} : vector<8x128xbf16>, vector<128x128xbf16>, vector<8x128xf32> -> vector<8x128xf32>
    %c0_8 = arith.constant 0 : index
    %c0_9 = arith.constant 0 : index
    %11 = vector.load %arg5[%c0_8, %c0_9] : memref<1x128xf32, #tpu.memory_space<vmem>>, vector<1x128xf32>
    %12 = vector.broadcast %11 : vector<1x128xf32> to vector<8x128xf32>
    %13 = arith.addf %10, %12 : vector<8x128xf32>
    %14 = math.tanh %13 : vector<8x128xf32>
    %15 = arith.truncf %14 : vector<8x128xf32> to vector<8x128xbf16>
    %c0_10 = arith.constant 0 : index
    %c0_11 = arith.constant 0 : index
    %16 = vector.load %arg6[%c0_10, %c0_11] : memref<128x128xbf16, #tpu.memory_space<vmem>>, vector<128x128xbf16>
    %cst_12 = arith.constant dense<0.000000e+00> : vector<8x128xf32>
    %17 = tpu.matmul %15, %16, %cst_12 {dimension_numbers = #tpu.dot_dimension_numbers<[1], [0], [0], [1], [0, 0, 1, 1], [], []>} : vector<8x128xbf16>, vector<128x128xbf16>, vector<8x128xf32> -> vector<8x128xf32>
    %c0_13 = arith.constant 0 : index
    %c0_14 = arith.constant 0 : index
    %18 = vector.load %arg7[%c0_13, %c0_14] : memref<1x128xf32, #tpu.memory_space<vmem>>, vector<1x128xf32>
    %19 = vector.broadcast %18 : vector<1x128xf32> to vector<8x128xf32>
    %20 = arith.addf %17, %19 : vector<8x128xf32>
    %21 = math.tanh %20 : vector<8x128xf32>
    %22 = arith.truncf %21 : vector<8x128xf32> to vector<8x128xbf16>
    %c0_15 = arith.constant 0 : index
    %c0_16 = arith.constant 0 : index
    %23 = vector.load %arg8[%c0_15, %c0_16] : memref<128x128xbf16, #tpu.memory_space<vmem>>, vector<128x128xbf16>
    %cst_17 = arith.constant dense<0.000000e+00> : vector<8x128xf32>
    %24 = tpu.matmul %22, %23, %cst_17 {dimension_numbers = #tpu.dot_dimension_numbers<[1], [0], [0], [1], [0, 0, 1, 1], [], []>} : vector<8x128xbf16>, vector<128x128xbf16>, vector<8x128xf32> -> vector<8x128xf32>
    %c0_18 = arith.constant 0 : index
    %c0_19 = arith.constant 0 : index
    %25 = vector.load %arg9[%c0_18, %c0_19] : memref<1x128xf32, #tpu.memory_space<vmem>>, vector<1x128xf32>
    %26 = vector.broadcast %25 : vector<1x128xf32> to vector<8x128xf32>
    %27 = arith.addf %24, %26 : vector<8x128xf32>
    %28 = arith.truncf %27 : vector<8x128xf32> to vector<8x128xbf16>
    %c0_20 = arith.constant 0 : index
    %c0_21 = arith.constant 0 : index
    %29 = vector.load %arg10[%c0_20, %c0_21] : memref<8x128xbf16, #tpu.memory_space<vmem>>, vector<8x128xbf16>
    tpu.vector_store %arg10[%c0_20, %c0_21], %28 {strides = array<i32>} : memref<8x128xbf16, #tpu.memory_space<vmem>>, vector<8x128xbf16>,
    return
  }
  func.func @transform_0(%arg0: i32) -> (i32, i32) {
    %c0_i32 = arith.constant 0 : i32
    %c0_i32_0 = arith.constant 0 : i32
    return %arg0, %c0_i32 : i32, i32
  }
  func.func @transform_1(%arg0: i32) -> (i32, i32) {
    %c0_i32 = arith.constant 0 : i32
    %c0_i32_0 = arith.constant 0 : i32
    %c0_i32_1 = arith.constant 0 : i32
    return %c0_i32, %c0_i32_0 : i32, i32
  }
  func.func @transform_2(%arg0: i32) -> (i32, i32) {
    %c0_i32 = arith.constant 0 : i32
    %c0_i32_0 = arith.constant 0 : i32
    %c0_i32_1 = arith.constant 0 : i32
    return %c0_i32, %c0_i32_0 : i32, i32
  }
  func.func @transform_3(%arg0: i32) -> (i32, i32) {
    %c0_i32 = arith.constant 0 : i32
    %c0_i32_0 = arith.constant 0 : i32
    %c0_i32_1 = arith.constant 0 : i32
    return %c0_i32, %c0_i32_0 : i32, i32
  }
  func.func @transform_4(%arg0: i32) -> (i32, i32) {
    %c0_i32 = arith.constant 0 : i32
    %c0_i32_0 = arith.constant 0 : i32
    %c0_i32_1 = arith.constant 0 : i32
    return %c0_i32, %c0_i32_0 : i32, i32
  }
  func.func @transform_5(%arg0: i32) -> (i32, i32) {
    %c0_i32 = arith.constant 0 : i32
    %c0_i32_0 = arith.constant 0 : i32
    %c0_i32_1 = arith.constant 0 : i32
    return %c0_i32, %c0_i32_0 : i32, i32
  }
  func.func @transform_6(%arg0: i32) -> (i32, i32) {
    %c0_i32 = arith.constant 0 : i32
    %c0_i32_0 = arith.constant 0 : i32
    %c0_i32_1 = arith.constant 0 : i32
    return %c0_i32, %c0_i32_0 : i32, i32
  }
  func.func @transform_7(%arg0: i32) -> (i32, i32) {
    %c0_i32 = arith.constant 0 : i32
    %c0_i32_0 = arith.constant 0 : i32
    %c0_i32_1 = arith.constant 0 : i32
    return %c0_i32, %c0_i32_0 : i32, i32
  }
  func.func @transform_8(%arg0: i32) -> (i32, i32) {
    %c0_i32 = arith.constant 0 : i32
    %c0_i32_0 = arith.constant 0 : i32
    %c0_i32_1 = arith.constant 0 : i32
    return %c0_i32, %c0_i32_0 : i32, i32
  }
  func.func @transform_9(%arg0: i32) -> (i32, i32) {
    %c0_i32 = arith.constant 0 : i32
    %c0_i32_0 = arith.constant 0 : i32
    return %arg0, %c0_i32 : i32, i32
  }
}

</mosaic_0001>

<bundles_post_ra>
// kernel: tpu_custom_call.1
= control target key start
LH: loop header
LB: loop body
LE: loop exit
PB: predicated region body
PF: predicated region fallthrough
CT: control target
= control target key end

     0   :  { %14 = vsyncpa [#allocation3], 0  ;;  %s1692_s0 = inlined_call_operand.hbm [shape: f32[8,784], index: 0, kind: input, shape index: {}]   ;;  %s1693_s1 = inlined_call_operand.hbm [shape: bf16[784,128], index: 1, kind: input, shape index: {}]   ;;  %s1694_s2 = inlined_call_operand.vmem [shape: f32[1,128], index: 2, kind: input, shape index: {}]   ;;  %s1695_s3 = inlined_call_operand.hbm [shape: bf16[128,128], index: 3, kind: input, shape index: {}]   ;;  %s1696_s4 = inlined_call_operand.vmem [shape: f32[1,128], index: 4, kind: input, shape index: {}]   ;;  %s1697_s5 = inlined_call_operand.hbm [shape: bf16[128,128], index: 5, kind: input, shape index: {}]   ;;  %s1698_s6 = inlined_call_operand.vmem [shape: f32[1,128], index: 6, kind: input, shape index: {}]   ;;  %s1699_s7 = inlined_call_operand.hbm [shape: bf16[128,128], index: 7, kind: input, shape index: {}]   ;;  %s1700_s8 = inlined_call_operand.vmem [shape: f32[1,128], index: 8, kind: input, shape index: {}]   ;;  %s1701_s9 = inlined_call_operand.hbm [shape: bf16[8,128], index: 9, kind: output, shape index: {}]  }
   0x1   :  { %15 = vsyncpa [#allocation6], 0 }
   0x2   :  { %16 = vsyncpa [#allocation9], 0 }
   0x3   :  { %17 = vsyncpa [#allocation4], 0  ;;  %s1503_s30 = smov [#allocation5]   ;;  %s1363_s13 = scalar_lea.hbm %s1693_s1, 6272 }
   0x4   :  { %s33_s10 = sshll.u32 %s1503_s30, 4  ;;  %p1364_p0 = scmp.ne.s32.totalorder %s1693_s1, %s1363_s13  ;;  %s34_s10 = int_to_ptr.vmem [resolvable:$true] %s33_s10 }
   0x5   :  { %p1367_p1 = scmp.lt.u32.totalorder %s1363_s13, %s1693_s1 }
   0x7   :  { %p1369_p2 = pnand %p1367_p1, %p1364_p0 }
   0x9   :  { %1372 = shalt.err (!%p1369_p2)
}
   0xa   :  { %s1373_s18 = scalar_lea.vmem %s34_s10, 6272  ;;  %p1378_p4 = scmp.lt.s32.totalorder %s34_s10, %s34_s10 }
   0xb   :  { %p1374_p3 = scmp.ne.s32.totalorder %s34_s10, %s1373_s18  ;;  %p1379_p5 = scmp.lt.s32.totalorder %s1373_s18, %s1373_s18 }
   0xd   :  { %p1380_p6 = por %p1379_p5, %p1378_p4 }
   0xf   :  { %p1381_p7 = pnand %p1380_p6, %p1374_p3 }
  0x11   :  { %1384 = shalt.err (!%p1381_p7)
}
  0x12   :  { %s1504_s19 = smov 64   ;;  %s1505_s20 = smov 4  }
  0x13   :  { %39 = dma.hbm_to_vmem [thread:$0]  %s1693_s1, 6272, %s34_s10, [#allocation6], %s1504_s19, %s1504_s19, %s1505_s20  }
  0x14   :  { %s1506_s23 = smov [#allocation8]   ;;  %s1507_s25 = smov [#allocation2]  }
  0x15   :  { %s61_s24 = sshll.u32 %s1506_s23, 4  ;;  %s24_s26 = sshll.u32 %s1507_s25, 4  ;;  %s62_s24 = int_to_ptr.vmem [resolvable:$true] %s61_s24  ;;  %s25_s26 = int_to_ptr.vmem [resolvable:$true] %s24_s26 }
  0x16   :  { %s1385_s29 = scalar_lea.hbm %s1697_s5, 1024 }
  0x17   :  { %p1386_p8 = scmp.ne.s32.totalorder %s1697_s5, %s1385_s29  ;;  %p1389_p9 = scmp.lt.u32.totalorder %s1385_s29, %s1697_s5 }
  0x19   :  { %p1391_p10 = pnand %p1389_p9, %p1386_p8 }
  0x1b   :  { %1394 = shalt.err (!%p1391_p10)
}
  0x1c   :  { %s1395_s1 = scalar_lea.vmem %s62_s24, 1024  ;;  %p1400_p12 = scmp.lt.s32.totalorder %s62_s24, %s62_s24 }
  0x1d   :  { %p1396_p11 = scmp.ne.s32.totalorder %s62_s24, %s1395_s1  ;;  %p1401_p13 = scmp.lt.s32.totalorder %s1395_s1, %s1395_s1 }
  0x1f   :  { %p1402_p0 = por %p1401_p13, %p1400_p12 }
  0x21   :  { %p1403_p1 = pnand %p1402_p0, %p1396_p11 }
  0x23   :  { %1406 = shalt.err (!%p1403_p1)
}
  0x24   :  { %67 = dma.hbm_to_vmem [thread:$0]  %s1697_s5, 1024, %s62_s24, [#allocation9], %s1504_s19, %s1504_s19, %s1505_s20  }
  0x25   :  { %s1407_s17 = scalar_lea.hbm %s1692_s0, 896 }
  0x26   :  { %p1408_p2 = scmp.ne.s32.totalorder %s1692_s0, %s1407_s17  ;;  %p1411_p3 = scmp.lt.u32.totalorder %s1407_s17, %s1692_s0 }
  0x28   :  { %p1413_p4 = pnand %p1411_p3, %p1408_p2 }
  0x2a   :  { %1416 = shalt.err (!%p1413_p4)
}
  0x2b   :  { %s1417_s25 = scalar_lea.vmem %s25_s26, 896  ;;  %p1422_p6 = scmp.lt.s32.totalorder %s25_s26, %s25_s26 }
  0x2c   :  { %p1418_p5 = scmp.ne.s32.totalorder %s25_s26, %s1417_s25  ;;  %p1423_p7 = scmp.lt.s32.totalorder %s1417_s25, %s1417_s25 }
  0x2e   :  { %p1424_p8 = por %p1423_p7, %p1422_p6 }
  0x30   :  { %p1425_p9 = pnand %p1424_p8, %p1418_p5 }
  0x32   :  { %1428 = shalt.err (!%p1425_p9)
}
  0x33   :  { %27 = dma.hbm_to_vmem [thread:$0]  %s1692_s0, 896, %s25_s26, [#allocation3]  }
  0x34   :  { %s1508_s27 = smov [#allocation7]   ;;  %s1509_s29 = smov [#allocation10]  }
  0x35   :  { %s47_s28 = sshll.u32 %s1508_s27, 4  ;;  %s75_s30 = sshll.u32 %s1509_s29, 4  ;;  %s48_s28 = int_to_ptr.vmem [resolvable:$true] %s47_s28  ;;  %s76_s30 = int_to_ptr.vmem [resolvable:$true] %s75_s30 }
  0x36   :  { %s1429_s13 = scalar_lea.hbm %s1695_s3, 1024 }
  0x37   :  { %p1430_p10 = scmp.ne.s32.totalorder %s1695_s3, %s1429_s13  ;;  %p1433_p11 = scmp.lt.u32.totalorder %s1429_s13, %s1695_s3 }
  0x39   :  { %p1435_p12 = pnand %p1433_p11, %p1430_p10 }
  0x3b   :  { %1438 = shalt.err (!%p1435_p12)
}
  0x3c   :  { %s1439_s0 = scalar_lea.vmem %s48_s28, 1024  ;;  %p1444_p0 = scmp.lt.s32.totalorder %s48_s28, %s48_s28 }
  0x3d   :  { %p1440_p13 = scmp.ne.s32.totalorder %s48_s28, %s1439_s0  ;;  %p1445_p1 = scmp.lt.s32.totalorder %s1439_s0, %s1439_s0 }
  0x3f   :  { %p1446_p2 = por %p1445_p1, %p1444_p0 }
  0x41   :  { %p1447_p3 = pnand %p1446_p2, %p1440_p13 }
  0x43   :  { %1450 = shalt.err (!%p1447_p3)
}
  0x44   :  { %53 = dma.hbm_to_vmem [thread:$0]  %s1695_s3, 1024, %s48_s28, [#allocation6], %s1504_s19, %s1504_s19, %s1505_s20  }
  0x45   :  { %s1451_s21 = scalar_lea.hbm %s1699_s7, 1024 }
  0x46   :  { %p1452_p4 = scmp.ne.s32.totalorder %s1699_s7, %s1451_s21  ;;  %p1455_p5 = scmp.lt.u32.totalorder %s1451_s21, %s1699_s7 }
  0x48   :  { %p1457_p6 = pnand %p1455_p5, %p1452_p4 }
  0x4a   :  { %1460 = shalt.err (!%p1457_p6)
}
  0x4b   :  { %s1461_s24 = scalar_lea.vmem %s76_s30, 1024  ;;  %p1466_p8 = scmp.lt.s32.totalorder %s76_s30, %s76_s30 }
  0x4c   :  { %p1462_p7 = scmp.ne.s32.totalorder %s76_s30, %s1461_s24  ;;  %p1467_p9 = scmp.lt.s32.totalorder %s1461_s24, %s1461_s24 }
  0x4e   :  { %p1468_p10 = por %p1467_p9, %p1466_p8 }
  0x50   :  { %p1469_p11 = pnand %p1468_p10, %p1462_p7 }
  0x52   :  { %1472 = shalt.err (!%p1469_p11)
}
  0x53   :  { %81 = dma.hbm_to_vmem [thread:$0]  %s1699_s7, 1024, %s76_s30, [#allocation9], %s1504_s19, %s1504_s19, %s1505_s20  }
  0x54   :  { %1495 = dma.done.wait [#allocation3], 896  }
  0x55   :  { %1496 = vsyncadd [#allocation3], 4294966400 }
  0x56   :  { %1497 = dma.done.wait [#allocation6], 7296  }
  0x57   :  { %1498 = vsyncadd [#allocation6], 4294960000 }
  0x58   :  { %1499 = dma.done.wait [#allocation9], 2048  }
  0x59   :  { %1500 = vsyncadd [#allocation9], 4294965248  ;;  %v1284_v0 = vld [vmem:[#allocation5 + $0x40] sm:$0xff]   ;;  %v1288_v4 = vld [vmem:[#allocation5 + $0x48] sm:$0xff]   ;;  %v1510_v44 = vmov 0.0   ;;  %vm1511_vm0 = vmmov 0  }
  0x5a   :  { %v1285_v1 = vld [vmem:[#allocation5] sm:$0xff]   ;;  %1113 = vmatprep.subr.bf16.mxu0 %v1284_v0  ;;  %v1289_v5 = vld [vmem:[#allocation5 + $0x8] sm:$0xff]   ;;  %v1292_v8 = vld [vmem:[#allocation5 + $0x50] sm:$0xff]   ;;  %vm513_vm1 = vcmask 130048   ;;  %s1512_s11 = smov [#allocation11]  }
  0x5b   :  { %v1286_v2 = vld [vmem:[#allocation5 + $0xc0] sm:$0xff]   ;;  %1114 = vmatpush3.bf16.msra.mxu0 %v1285_v1  ;;  %v1290_v6 = vld [vmem:[#allocation5 + $0xc8] sm:$0xff]   ;;  %v1293_v9 = vld [vmem:[#allocation5 + $0x10] sm:$0xff]   ;;  %s1024_s12 = sshll.u32 %s1512_s11, 4  ;;  %s1025_s12 = int_to_ptr.vmem [resolvable:$true] %s1024_s12 }
  0x5c   :  { %v1287_v3 = vld [vmem:[#allocation5 + $0x80] sm:$0xff]   ;;  %1135 = vmatprep.subr.bf16.mxu1 %v1286_v2  ;;  %1115 = vmatprep.subr.bf16.mxu0 %v1288_v4  ;;  %v1291_v7 = vld [vmem:[#allocation5 + $0x88] sm:$0xff]   ;;  %v1294_v10 = vld [vmem:[#allocation5 + $0xd0] sm:$0xff]   ;;  %p1478_p13 = scmp.lt.s32.totalorder %s1025_s12, %s1025_s12 }
  0x5d   :  { %1136 = vmatpush3.bf16.msra.mxu1 %v1287_v3  ;;  %v1295_v11 = vld [vmem:[#allocation5 + $0x90] sm:$0xff]   ;;  %v1296_v12 = vld [vmem:[#allocation5 + $0x58] sm:$0xff]   ;;  %v1300_v16 = vld [vmem:[#allocation5 + $0x60] sm:$0xff]  }
  0x5e   :  { %1137 = vmatprep.subr.bf16.mxu1 %v1290_v6  ;;  %v1297_v13 = vld [vmem:[#allocation5 + $0x18] sm:$0xff]   ;;  %v1301_v17 = vld [vmem:[#allocation5 + $0x20] sm:$0xff]   ;;  %v1304_v20 = vld [vmem:[#allocation5 + $0x68] sm:$0xff]  }
  0x5f   :  { %1116 = vmatpush3.bf16.msra.mxu0 %v1289_v5  ;;  %v1298_v14 = vld [vmem:[#allocation5 + $0xd8] sm:$0xff]   ;;  %v1302_v18 = vld [vmem:[#allocation5 + $0xe0] sm:$0xff]   ;;  %v1305_v21 = vld [vmem:[#allocation5 + $0x28] sm:$0xff]  }
  0x60   :  { %1117 = vmatprep.subr.bf16.mxu0 %v1292_v8  ;;  %v1299_v15 = vld [vmem:[#allocation5 + $0x98] sm:$0xff]   ;;  %v1303_v19 = vld [vmem:[#allocation5 + $0xa0] sm:$0xff]   ;;  %v1306_v22 = vld [vmem:[#allocation5 + $0xe8] sm:$0xff]  }
  0x61   :  { %1138 = vmatpush3.bf16.msra.mxu1 %v1291_v7  ;;  %v1307_v23 = vld [vmem:[#allocation5 + $0xa8] sm:$0xff]   ;;  %v1308_v24 = vld [vmem:[#allocation5 + $0x70] sm:$0xff]   ;;  %v1312_v28 = vld [vmem:[#allocation5 + $0x78] sm:$0xff]  }
  0x62   :  { %1139 = vmatprep.subr.bf16.mxu1 %v1294_v10  ;;  %v1309_v25 = vld [vmem:[#allocation5 + $0x30] sm:$0xff]   ;;  %v1313_v29 = vld [vmem:[#allocation5 + $0x38] sm:$0xff]   ;;  %v100_v34 = vld [vmem:[#allocation2] sm:$0xff] }
  0x63   :  { %1118 = vmatpush3.bf16.msra.mxu0 %v1293_v9  ;;  %v1310_v26 = vld [vmem:[#allocation5 + $0xf0] sm:$0xff]   ;;  %v1314_v30 = vld [vmem:[#allocation5 + $0xf8] sm:$0xff]   ;;  %v107_v35 = vpack.c.bf16 %v100_v34, %v100_v34  ;;  %v1316_v36 = vld [vmem:[#allocation5 + $0x140] sm:$0xff]  }
  0x64   :  { %1119 = vmatprep.subr.bf16.mxu0 %v1296_v12  ;;  %v1311_v27 = vld [vmem:[#allocation5 + $0xb0] sm:$0xff]   ;;  %v1315_v33 = vld [vmem:[#allocation5 + $0xb8] sm:$0xff]   ;;  %v103_v37 = vld [vmem:[#allocation2 + $0x18] sm:$0xff] }
  0x65   :  { %1140 = vmatpush3.bf16.msra.mxu1 %v1295_v11  ;;  %v101_v31 = vld [vmem:[#allocation2 + $0x8] sm:$0xff]  ;;  %v110_v38 = vpack.c.bf16 %v103_v37, %v103_v37  ;;  %v1317_v39 = vld [vmem:[#allocation5 + $0x100] sm:$0xff]   ;;  %v102_v40 = vld [vmem:[#allocation2 + $0x10] sm:$0xff] }
  0x66   :  { %1141 = vmatprep.subr.bf16.mxu1 %v1298_v14  ;;  %v108_v32 = vpack.c.bf16 %v101_v31, %v101_v31  ;;  %v109_v41 = vpack.c.bf16 %v102_v40, %v102_v40  ;;  %v1318_v42 = vld [vmem:[#allocation5 + $0x148] sm:$0xff]   ;;  %v1320_v45 = vld [vmem:[#allocation5 + $0x150] sm:$0xff]   ;;  %v1322_v47 = vld [vmem:[#allocation5 + $0x158] sm:$0xff]  }
  0x67   :  { %1120 = vmatpush3.bf16.msra.mxu0 %v1297_v13  ;;  %589 = vmatprep.mubr.bf16.mxu1 %v110_v38  ;;  %v1319_v43 = vld [vmem:[#allocation5 + $0x108] sm:$0xff]   ;;  %v1321_v46 = vld [vmem:[#allocation5 + $0x110] sm:$0xff]   ;;  %v1323_v48 = vld [vmem:[#allocation5 + $0x118] sm:$0xff]  }
  0x68   :  { %1121 = vmatprep.subr.bf16.mxu0 %v1300_v16  ;;  %549 = vmatprep.mubr.bf16.mxu0 %v108_v32  ;;  %v1324_v49 = vld [vmem:[#allocation5 + $0x160] sm:$0xff]   ;;  %v1326_v51 = vld [vmem:[#allocation5 + $0x168] sm:$0xff]   ;;  %v105_v54 = vld [vmem:[#allocation2 + $0x28] sm:$0xff] }
  0x69   :  { %1142 = vmatpush3.bf16.msra.mxu1 %v1299_v15  ;;  %v1325_v50 = vld [vmem:[#allocation5 + $0x120] sm:$0xff]   ;;  %v1327_v52 = vld [vmem:[#allocation5 + $0x128] sm:$0xff]   ;;  %v1328_v55 = vld [vmem:[#allocation5 + $0x170] sm:$0xff]   ;;  %v112_v56 = vpack.c.bf16 %v105_v54, %v105_v54 }
  0x6a   :  { %1143 = vmatprep.subr.bf16.mxu1 %v1302_v18  ;;  %v1332_v53 = vld [vmem:[#allocation5 + $0x180] sm:$0xff]   ;;  %v106_v57 = vld [vmem:[#allocation2 + $0x30] sm:$0xff]  ;;  %v1329_v59 = vld [vmem:[#allocation5 + $0x130] sm:$0xff]  }
  0x6b   :  { %1122 = vmatpush3.bf16.msra.mxu0 %v1301_v17  ;;  %v113_v58 = vpack.c.bf16 %v106_v57, %v106_v57  ;;  %v1330_v60 = vld [vmem:[#allocation5 + $0x178] sm:$0xff]   ;;  %v104_v62 = vld [vmem:[#allocation2 + $0x20] sm:$0xff]  ;;  %v1334_v1 = vld [vmem:[#allocation7 + $0x8] sm:$0xff]  }
  0x6c   :  { %1123 = vmatprep.subr.bf16.mxu0 %v1304_v20  ;;  %v1331_v61 = vld [vmem:[#allocation5 + $0x138] sm:$0xff]   ;;  %v111_v63 = vpack.c.bf16 %v104_v62, %v104_v62  ;;  %v1333_v0 = vld [vmem:[#allocation7] sm:$0xff]   ;;  %v1336_v3 = vld [vmem:[#allocation7 + $0x18] sm:$0xff]  }
  0x6d   :  { %1144 = vmatpush3.bf16.msra.mxu1 %v1303_v19  ;;  %v1335_v2 = vld [vmem:[#allocation7 + $0x10] sm:$0xff]   ;;  %v1337_v4 = vld [vmem:[#allocation7 + $0x20] sm:$0xff]   ;;  %v1338_v5 = vld [vmem:[#allocation7 + $0x28] sm:$0xff]  }
  0x6e   :  { %1145 = vmatprep.subr.bf16.mxu1 %v1306_v22  ;;  %v1339_v6 = vld [vmem:[#allocation7 + $0x30] sm:$0xff]   ;;  %v1340_v7 = vld [vmem:[#allocation7 + $0x38] sm:$0xff]   ;;  %v1341_v8 = vld [vmem:[#allocation8] sm:$0xff]  }
  0x6f   :  { %1124 = vmatpush3.bf16.msra.mxu0 %v1305_v21  ;;  %v1342_v9 = vld [vmem:[#allocation8 + $0x8] sm:$0xff]   ;;  %v1343_v10 = vld [vmem:[#allocation8 + $0x10] sm:$0xff]   ;;  %v1344_v11 = vld [vmem:[#allocation8 + $0x18] sm:$0xff]  }
  0x70   :  { %1125 = vmatprep.subr.bf16.mxu0 %v1308_v24  ;;  %v1035_v13 = vld [vmem:[%s1694_s2] ss:$0 sm:$0xff]  ;;  %v1347_v40 = vld [vmem:[#allocation8 + $0x30] sm:$0xff]  }
  0x71   :  { %1146 = vmatpush3.bf16.msra.mxu1 %v1307_v23  ;;  %v1345_v38 = vld [vmem:[#allocation8 + $0x20] sm:$0xff]   ;;  %v1355_v57 = vld [vmem:[#allocation10 + $0x30] sm:$0xff]  }
  0x72   :  { %1147 = vmatprep.subr.bf16.mxu1 %v1310_v26 }
  0x73   :  { %1126 = vmatpush3.bf16.msra.mxu0 %v1309_v25 }
  0x74   :  { %1127 = vmatprep.subr.bf16.mxu0 %v1312_v28 }
  0x75   :  { %1148 = vmatpush3.bf16.msra.mxu1 %v1311_v27 }
  0x76   :  { %1149 = vmatprep.subr.bf16.mxu1 %v1314_v30 }
  0x77   :  { %1128 = vmatpush3.bf16.msra.mxu0 %v1313_v29 }
  0x78   :  { %1157 = vmatprep.subr.bf16.mxu0 %v1316_v36 }
  0x79   :  { %1150 = vmatpush3.bf16.msra.mxu1 %v1315_v33 }
  0x7a   :  { %550 = vmatmul.mubr.bf16.vlgmr.msra.gmra.mrb[0].mxu0 %v107_v35  ;;  %1208 = vmatprep.subr.bf16.mxu1 %v1510_v44 }
  0x7b   :  { %1158 = vmatpush3.bf16.msra.mxu0 %v1317_v39  ;;  %629 = vmatprep.mubr.bf16.mxu0 %v112_v56  ;;  %v1346_v39 = vld [vmem:[#allocation8 + $0x28] sm:$0xff]  }
  0x7c   :  { %590 = vmatmul.mubr.bf16.vlgmr.msra.gmra.mrb[0].mxu1 %v109_v41  ;;  %1159 = vmatprep.subr.bf16.mxu0 %v1318_v42  ;;  %v1348_v41 = vld [vmem:[#allocation8 + $0x38] sm:$0xff]   ;;  %v1349_v42 = vld [vmem:[#allocation10] sm:$0xff]   ;;  %v1354_v56 = vld [vmem:[#allocation10 + $0x28] sm:$0xff]  }
  0x7d   :  { %1210 = vmatprep.mubr.msk.bf16.mxu1 %vm1511_vm0, %v1510_v44  ;;  %1209 = vmatpush3.bf16.msra.mxu1 %v1332_v53 }
  0x7e   :  { %1214 = vmatprep.subr.bf16.mxu1 %v1510_v44 }
  0x7f   :  { %1160 = vmatpush3.bf16.msra.mxu0 %v1319_v43  ;;  %v1350_v43 = vld [vmem:[#allocation10 + $0x8] sm:$0xff]  }
  0x80   :  { %1161 = vmatprep.subr.bf16.mxu0 %v1320_v45  ;;  %v1351_v45 = vld [vmem:[#allocation10 + $0x10] sm:$0xff]  }
  0x83   :  { %1162 = vmatpush3.bf16.msra.mxu0 %v1321_v46  ;;  %v1352_v46 = vld [vmem:[#allocation10 + $0x18] sm:$0xff]  }
  0x84   :  { %1163 = vmatprep.subr.bf16.mxu0 %v1322_v47  ;;  %1211 = vmatmul.mubr.msk.bf16.vlgmr.msra.gmra.mrb[4].mxu1 %vm513_vm1, %v113_v58  ;;  %v1086_v47 = vld [vmem:[%s1696_s4] ss:$0 sm:$0xff]  ;;  %v1356_v58 = vld [vmem:[#allocation10 + $0x38] sm:$0xff]  }
  0x85   :  { %1230 = vmatprep.mubr.msk.bf16.mxu1 %vm1511_vm0, %v1510_v44  ;;  %1215 = vmatpush3.bf16.msra.mxu1 %v1333_v0 }
  0x86   :  { %1216 = vmatprep.subr.bf16.mxu1 %v1510_v44 }
  0x87   :  { %1164 = vmatpush3.bf16.msra.mxu0 %v1323_v48 }
  0x88   :  { %1165 = vmatprep.subr.bf16.mxu0 %v1324_v49 }
  0x89   :  { %1217 = vmatpush3.bf16.msra.mxu1 %v1334_v1 }
  0x8a   :  { %1218 = vmatprep.subr.bf16.mxu1 %v1510_v44 }
  0x8b   :  { %1166 = vmatpush3.bf16.msra.mxu0 %v1325_v50 }
  0x8c   :  { %1167 = vmatprep.subr.bf16.mxu0 %v1326_v51 }
  0x8d   :  { %1219 = vmatpush3.bf16.msra.mxu1 %v1335_v2 }
  0x8e   :  { %1220 = vmatprep.subr.bf16.mxu1 %v1510_v44 }
  0x8f   :  { %1168 = vmatpush3.bf16.msra.mxu0 %v1327_v52 }
  0x90   :  { %1169 = vmatprep.subr.bf16.mxu0 %v1328_v55  ;;  %v1353_v55 = vld [vmem:[#allocation10 + $0x20] sm:$0xff]  }
  0x91   :  { %1221 = vmatpush3.bf16.msra.mxu1 %v1336_v3  ;;  %v1104_v3 = vld [vmem:[%s1700_s8] ss:$0 sm:$0xff] }
  0x92   :  { %1222 = vmatprep.subr.bf16.mxu1 %v1510_v44 }
  0x93   :  { %1170 = vmatpush3.bf16.msra.mxu0 %v1329_v59  ;;  %v1095_v59 = vld [vmem:[%s1698_s6] ss:$0 sm:$0xff]  ;;  %s1473_s6 = scalar_lea.vmem %s1025_s12, 64 }
  0x94   :  { %1171 = vmatprep.subr.bf16.mxu0 %v1330_v60  ;;  %p1474_p12 = scmp.ne.s32.totalorder %s1025_s12, %s1473_s6  ;;  %p1479_p0 = scmp.lt.s32.totalorder %s1473_s6, %s1473_s6 }
  0x95   :  { %1223 = vmatpush3.bf16.msra.mxu1 %v1337_v4 }
  0x96   :  { %1224 = vmatprep.subr.bf16.mxu1 %v1510_v44  ;;  %p1480_p1 = por %p1479_p0, %p1478_p13 }
  0x97   :  { %1172 = vmatpush3.bf16.msra.mxu0 %v1331_v61 }
  0x98   :  { %1234 = vmatprep.subr.bf16.mxu0 %v1510_v44  ;;  %p1481_p2 = pnand %p1480_p1, %p1474_p12 }
  0x99   :  { %1225 = vmatpush3.bf16.msra.mxu1 %v1338_v5 }
  0x9a   :  { %630 = vmatmul.mubr.bf16.vlgmr.msra.gmra.mrb[4].mxu0 %v111_v63  ;;  %1226 = vmatprep.subr.bf16.mxu1 %v1510_v44 }
  0x9b   :  { %1250 = vmatprep.mubr.msk.bf16.mxu0 %vm1511_vm0, %v1510_v44  ;;  %1235 = vmatpush3.bf16.msra.mxu0 %v1341_v8 }
  0x9c   :  { %1236 = vmatprep.subr.bf16.mxu0 %v1510_v44 }
  0x9d   :  { %1227 = vmatpush3.bf16.msra.mxu1 %v1339_v6 }
  0x9e   :  { %1228 = vmatprep.subr.bf16.mxu1 %v1510_v44 }
  0x9f   :  { %1237 = vmatpush3.bf16.msra.mxu0 %v1342_v9 }
  0xa0   :  { %1238 = vmatprep.subr.bf16.mxu0 %v1510_v44 }
  0xa1   :  { %1229 = vmatpush3.bf16.msra.mxu1 %v1340_v7 }
  0xa2   :  { %1254 = vmatprep.subr.bf16.mxu1 %v1510_v44 }
  0xa3   :  { %1239 = vmatpush3.bf16.msra.mxu0 %v1343_v10 }
  0xa4   :  { %1240 = vmatprep.subr.bf16.mxu0 %v1510_v44 }
  0xa7   :  { %1241 = vmatpush3.bf16.msra.mxu0 %v1344_v11 }
  0xa8   :  { %1242 = vmatprep.subr.bf16.mxu0 %v1510_v44 }
  0xab   :  { %1243 = vmatpush3.bf16.msra.mxu0 %v1345_v38 }
  0xac   :  { %1244 = vmatprep.subr.bf16.mxu0 %v1510_v44 }
  0xaf   :  { %1245 = vmatpush3.bf16.msra.mxu0 %v1346_v39 }
  0xb0   :  { %1246 = vmatprep.subr.bf16.mxu0 %v1510_v44 }
  0xb3   :  { %1247 = vmatpush3.bf16.msra.mxu0 %v1347_v40 }
  0xb4   :  { %1248 = vmatprep.subr.bf16.mxu0 %v1510_v44 }
  0xb7   :  { %1249 = vmatpush3.bf16.msra.mxu0 %v1348_v41 }
 0x14d   :  { %v1129_v12 = vpop.f32.mrb[0].mxu0 }
 0x14e   :  { %v1130_v14 = vpop.f32.mrb[1].mxu0 }
 0x14f   :  { %v1131_v15 = vadd.f32 %v1130_v14, %v1129_v12  ;;  %v1132_v16 = vpop.f32.mrb[2].mxu0  ;;  %v1151_v17 = vpop.f32.mrb[0].mxu1 }
 0x150   :  { %v1133_v18 = vpop.f32.mrb[3].mxu0  ;;  %v1152_v20 = vpop.f32.mrb[1].mxu1 }
 0x151   :  { %v552_v19 = vadd.f32 %v1131_v15, %v1035_v13  ;;  %v1153_v21 = vadd.f32 %v1152_v20, %v1151_v17  ;;  %v1154_v22 = vpop.f32.mrb[2].mxu1 }
 0x152   :  { %v1155_v23 = vpop.f32.mrb[3].mxu1 }
 0x153   :  { %v592_v24 = vadd.f32 %v1153_v21, %v552_v19 }
 0x157   :  { %v671_v25 = vpop.f32.mrb[4].mxu1 }
 0x158   :  { %v1212_v26 = vpop.f32.mrb[5].mxu1 }
 0x159   :  { %v674_v27 = vpop.f32.mrb[6].mxu1 }
 0x15a   :  { %v1213_v28 = vpop.f32.mrb[7].mxu1 }
 0x16d   :  { %v1173_v29 = vpop.f32.mrb[4].mxu0 }
 0x16e   :  { %v1174_v30 = vpop.f32.mrb[5].mxu0 }
 0x16f   :  { %v1175_v31 = vadd.f32 %v1174_v30, %v1173_v29  ;;  %v1176_v32 = vpop.f32.mrb[6].mxu0 }
 0x170   :  { %v1177_v33 = vpop.f32.mrb[7].mxu0 }
 0x171   :  { %v632_v34 = vadd.f32 %v1175_v31, %v592_v24 }
 0x173   :  { %v672_v35 = vadd.f32 %v671_v25, %v632_v34 }
 0x175   :  { %1357 = vtanh.f32 %v672_v35 }
 0x17f   :  { %v1358_v36 = vpop.eup %1357 }
 0x180   :  { %v678_v37 = vpack.c.bf16 %v1358_v36, %v1358_v36 }
 0x182   :  { %1231 = vmatmul.mubr.bf16.vlgmr.msra.gmra.mrb[8].mxu1 %v678_v37 }
 0x183   :  { %1270 = vmatprep.mubr.msk.bf16.mxu1 %vm1511_vm0, %v1510_v44  ;;  %1255 = vmatpush3.bf16.msra.mxu1 %v1349_v42 }
 0x184   :  { %1256 = vmatprep.subr.bf16.mxu1 %v1510_v44 }
 0x187   :  { %1257 = vmatpush3.bf16.msra.mxu1 %v1350_v43 }
 0x188   :  { %1258 = vmatprep.subr.bf16.mxu1 %v1510_v44 }
 0x18b   :  { %1259 = vmatpush3.bf16.msra.mxu1 %v1351_v45 }
 0x18c   :  { %1260 = vmatprep.subr.bf16.mxu1 %v1510_v44 }
 0x18f   :  { %1261 = vmatpush3.bf16.msra.mxu1 %v1352_v46 }
 0x190   :  { %1262 = vmatprep.subr.bf16.mxu1 %v1510_v44 }
 0x193   :  { %1263 = vmatpush3.bf16.msra.mxu1 %v1353_v55 }
 0x194   :  { %1264 = vmatprep.subr.bf16.mxu1 %v1510_v44 }
 0x197   :  { %1265 = vmatpush3.bf16.msra.mxu1 %v1354_v56 }
 0x198   :  { %1266 = vmatprep.subr.bf16.mxu1 %v1510_v44 }
 0x19b   :  { %1267 = vmatpush3.bf16.msra.mxu1 %v1355_v57 }
 0x19c   :  { %1268 = vmatprep.subr.bf16.mxu1 %v1510_v44 }
 0x19f   :  { %1269 = vmatpush3.bf16.msra.mxu1 %v1356_v58 }
 0x255   :  { %v784_v48 = vpop.f32.mrb[8].mxu1 }
 0x256   :  { %v785_v49 = vadd.f32 %v1086_v47, %v784_v48  ;;  %v1232_v50 = vpop.f32.mrb[9].mxu1 }
 0x257   :  { %v787_v51 = vpop.f32.mrb[10].mxu1 }
 0x258   :  { %1359 = vtanh.f32 %v785_v49  ;;  %v1233_v52 = vpop.f32.mrb[11].mxu1 }
 0x262   :  { %v1360_v53 = vpop.eup %1359 }
 0x263   :  { %v791_v54 = vpack.c.bf16 %v1360_v53, %v1360_v53 }
 0x265   :  { %1251 = vmatmul.mubr.bf16.vlgmr.msra.gmra.mrb[8].mxu0 %v791_v54 }
 0x338   :  { %v897_v60 = vpop.f32.mrb[8].mxu0 }
 0x339   :  { %v898_v61 = vadd.f32 %v1095_v59, %v897_v60  ;;  %v1252_v62 = vpop.f32.mrb[9].mxu0 }
 0x33a   :  { %v900_v63 = vpop.f32.mrb[10].mxu0 }
 0x33b   :  { %1361 = vtanh.f32 %v898_v61  ;;  %v1253_v0 = vpop.f32.mrb[11].mxu0 }
 0x345   :  { %v1362_v1 = vpop.eup %1361 }
 0x346   :  { %v904_v2 = vpack.c.bf16 %v1362_v1, %v1362_v1 }
 0x348   :  { %1271 = vmatmul.mubr.bf16.vlgmr.msra.gmra.mrb[12].mxu1 %v904_v2 }
 0x41b   :  { %v1010_v44 = vpop.f32.mrb[12].mxu1 }
 0x41c   :  { %v1011_v4 = vadd.f32 %v1104_v3, %v1010_v44  ;;  %v1272_v5 = vpop.f32.mrb[13].mxu1 }
 0x41d   :  { %v1013_v6 = vpop.f32.mrb[14].mxu1 }
 0x41e   :  { %v1016_v7 = vpack.c.bf16 %v1011_v4, %v1011_v4  ;;  %v1273_v8 = vpop.f32.mrb[15].mxu1 }
 0x420   :  { %1017 = vst [vmem:[#allocation11] sm:$0xf] %v1016_v7 }
 0x421   :  { %1484 = shalt.err (!%p1481_p2)
}
 0x422   :  { %s1485_s8 = scalar_lea.hbm %s1701_s9, 64 }
 0x423   :  { %p1486_p3 = scmp.ne.s32.totalorder %s1701_s9, %s1485_s8  ;;  %p1489_p4 = scmp.lt.u32.totalorder %s1485_s8, %s1701_s9 }
 0x425   :  { %p1491_p5 = pnand %p1489_p4, %p1486_p3 }
 0x427   :  { %1494 = shalt.err (!%p1491_p5)
}
 0x428   :  { %1027 = dma.vmem_to_hbm [thread:$0]  %s1025_s12, 64, %s1701_s9, [#allocation4]  }
 0x429   :  { %1501 = dma.done.wait [#allocation4], 64  }
 0x42a   :  { %1502 = vsyncadd [#allocation4], 4294967232 }
 0x42b   :  { %1031 = vsyncpa [#allocation3], 1 }
 0x42c   :  { %1032 = vsyncpa [#allocation6], 1 }
 0x42d   :  { %1033 = vsyncpa [#allocation9], 1 }
 0x42e   :  { %1034 = vsyncpa [#allocation4], 1 }

// kernel: tpu_custom_call.1
= control target key start
LH: loop header
LB: loop body
LE: loop exit
PB: predicated region body
PF: predicated region fallthrough
CT: control target
= control target key end

     0   :  { %14 = vsyncpa [#allocation3], 0  ;;  %s1692_s0 = inlined_call_operand.hbm [shape: f32[8,784], index: 0, kind: input, shape index: {}]   ;;  %s1693_s1 = inlined_call_operand.hbm [shape: bf16[784,128], index: 1, kind: input, shape index: {}]   ;;  %s1694_s2 = inlined_call_operand.vmem [shape: f32[1,128], index: 2, kind: input, shape index: {}]   ;;  %s1695_s3 = inlined_call_operand.hbm [shape: bf16[128,128], index: 3, kind: input, shape index: {}]   ;;  %s1696_s4 = inlined_call_operand.vmem [shape: f32[1,128], index: 4, kind: input, shape index: {}]   ;;  %s1697_s5 = inlined_call_operand.hbm [shape: bf16[128,128], index: 5, kind: input, shape index: {}]   ;;  %s1698_s6 = inlined_call_operand.vmem [shape: f32[1,128], index: 6, kind: input, shape index: {}]   ;;  %s1699_s7 = inlined_call_operand.hbm [shape: bf16[128,128], index: 7, kind: input, shape index: {}]   ;;  %s1700_s8 = inlined_call_operand.vmem [shape: f32[1,128], index: 8, kind: input, shape index: {}]   ;;  %s1701_s9 = inlined_call_operand.hbm [shape: bf16[8,128], index: 9, kind: output, shape index: {}]  }
   0x1   :  { %15 = vsyncpa [#allocation6], 0 }
   0x2   :  { %16 = vsyncpa [#allocation9], 0 }
   0x3   :  { %17 = vsyncpa [#allocation4], 0  ;;  %s1503_s30 = smov [#allocation5]   ;;  %s1363_s13 = scalar_lea.hbm %s1693_s1, 6272 }
   0x4   :  { %s33_s10 = sshll.u32 %s1503_s30, 4  ;;  %p1364_p0 = scmp.ne.s32.totalorder %s1693_s1, %s1363_s13  ;;  %s34_s10 = int_to_ptr.vmem [resolvable:$true] %s33_s10 }
   0x5   :  { %p1367_p1 = scmp.lt.u32.totalorder %s1363_s13, %s1693_s1 }
   0x7   :  { %p1369_p2 = pnand %p1367_p1, %p1364_p0 }
   0x9   :  { %1372 = shalt.err (!%p1369_p2)
}
   0xa   :  { %s1373_s18 = scalar_lea.vmem %s34_s10, 6272  ;;  %p1378_p4 = scmp.lt.s32.totalorder %s34_s10, %s34_s10 }
   0xb   :  { %p1374_p3 = scmp.ne.s32.totalorder %s34_s10, %s1373_s18  ;;  %p1379_p5 = scmp.lt.s32.totalorder %s1373_s18, %s1373_s18 }
   0xd   :  { %p1380_p6 = por %p1379_p5, %p1378_p4 }
   0xf   :  { %p1381_p7 = pnand %p1380_p6, %p1374_p3 }
  0x11   :  { %1384 = shalt.err (!%p1381_p7)
}
  0x12   :  { %s1504_s19 = smov 64   ;;  %s1505_s20 = smov 4  }
  0x13   :  { %39 = dma.hbm_to_vmem [thread:$0]  %s1693_s1, 6272, %s34_s10, [#allocation6], %s1504_s19, %s1504_s19, %s1505_s20  }
  0x14   :  { %s1506_s23 = smov [#allocation8]   ;;  %s1507_s25 = smov [#allocation2]  }
  0x15   :  { %s61_s24 = sshll.u32 %s1506_s23, 4  ;;  %s24_s26 = sshll.u32 %s1507_s25, 4  ;;  %s62_s24 = int_to_ptr.vmem [resolvable:$true] %s61_s24  ;;  %s25_s26 = int_to_ptr.vmem [resolvable:$true] %s24_s26 }
  0x16   :  { %s1385_s29 = scalar_lea.hbm %s1697_s5, 1024 }
  0x17   :  { %p1386_p8 = scmp.ne.s32.totalorder %s1697_s5, %s1385_s29  ;;  %p1389_p9 = scmp.lt.u32.totalorder %s1385_s29, %s1697_s5 }
  0x19   :  { %p1391_p10 = pnand %p1389_p9, %p1386_p8 }
  0x1b   :  { %1394 = shalt.err (!%p1391_p10)
}
  0x1c   :  { %s1395_s1 = scalar_lea.vmem %s62_s24, 1024  ;;  %p1400_p12 = scmp.lt.s32.totalorder %s62_s24, %s62_s24 }
  0x1d   :  { %p1396_p11 = scmp.ne.s32.totalorder %s62_s24, %s1395_s1  ;;  %p1401_p13 = scmp.lt.s32.totalorder %s1395_s1, %s1395_s1 }
  0x1f   :  { %p1402_p0 = por %p1401_p13, %p1400_p12 }
  0x21   :  { %p1403_p1 = pnand %p1402_p0, %p1396_p11 }
  0x23   :  { %1406 = shalt.err (!%p1403_p1)
}
  0x24   :  { %67 = dma.hbm_to_vmem [thread:$0]  %s1697_s5, 1024, %s62_s24, [#allocation9], %s1504_s19, %s1504_s19, %s1505_s20  }
  0x25   :  { %s1407_s17 = scalar_lea.hbm %s1692_s0, 896 }
  0x26   :  { %p1408_p2 = scmp.ne.s32.totalorder %s1692_s0, %s1407_s17  ;;  %p1411_p3 = scmp.lt.u32.totalorder %s1407_s17, %s1692_s0 }
  0x28   :  { %p1413_p4 = pnand %p1411_p3, %p1408_p2 }
  0x2a   :  { %1416 = shalt.err (!%p1413_p4)
}
  0x2b   :  { %s1417_s25 = scalar_lea.vmem %s25_s26, 896  ;;  %p1422_p6 = scmp.lt.s32.totalorder %s25_s26, %s25_s26 }
  0x2c   :  { %p1418_p5 = scmp.ne.s32.totalorder %s25_s26, %s1417_s25  ;;  %p1423_p7 = scmp.lt.s32.totalorder %s1417_s25, %s1417_s25 }
  0x2e   :  { %p1424_p8 = por %p1423_p7, %p1422_p6 }
  0x30   :  { %p1425_p9 = pnand %p1424_p8, %p1418_p5 }
  0x32   :  { %1428 = shalt.err (!%p1425_p9)
}
  0x33   :  { %27 = dma.hbm_to_vmem [thread:$0]  %s1692_s0, 896, %s25_s26, [#allocation3]  }
  0x34   :  { %s1508_s27 = smov [#allocation7]   ;;  %s1509_s29 = smov [#allocation10]  }
  0x35   :  { %s47_s28 = sshll.u32 %s1508_s27, 4  ;;  %s75_s30 = sshll.u32 %s1509_s29, 4  ;;  %s48_s28 = int_to_ptr.vmem [resolvable:$true] %s47_s28  ;;  %s76_s30 = int_to_ptr.vmem [resolvable:$true] %s75_s30 }
  0x36   :  { %s1429_s13 = scalar_lea.hbm %s1695_s3, 1024 }
  0x37   :  { %p1430_p10 = scmp.ne.s32.totalorder %s1695_s3, %s1429_s13  ;;  %p1433_p11 = scmp.lt.u32.totalorder %s1429_s13, %s1695_s3 }
  0x39   :  { %p1435_p12 = pnand %p1433_p11, %p1430_p10 }
  0x3b   :  { %1438 = shalt.err (!%p1435_p12)
}
  0x3c   :  { %s1439_s0 = scalar_lea.vmem %s48_s28, 1024  ;;  %p1444_p0 = scmp.lt.s32.totalorder %s48_s28, %s48_s28 }
  0x3d   :  { %p1440_p13 = scmp.ne.s32.totalorder %s48_s28, %s1439_s0  ;;  %p1445_p1 = scmp.lt.s32.totalorder %s1439_s0, %s1439_s0 }
  0x3f   :  { %p1446_p2 = por %p1445_p1, %p1444_p0 }
  0x41   :  { %p1447_p3 = pnand %p1446_p2, %p1440_p13 }
  0x43   :  { %1450 = shalt.err (!%p1447_p3)
}
  0x44   :  { %53 = dma.hbm_to_vmem [thread:$0]  %s1695_s3, 1024, %s48_s28, [#allocation6], %s1504_s19, %s1504_s19, %s1505_s20  }
  0x45   :  { %s1451_s21 = scalar_lea.hbm %s1699_s7, 1024 }
  0x46   :  { %p1452_p4 = scmp.ne.s32.totalorder %s1699_s7, %s1451_s21  ;;  %p1455_p5 = scmp.lt.u32.totalorder %s1451_s21, %s1699_s7 }
  0x48   :  { %p1457_p6 = pnand %p1455_p5, %p1452_p4 }
  0x4a   :  { %1460 = shalt.err (!%p1457_p6)
}
  0x4b   :  { %s1461_s24 = scalar_lea.vmem %s76_s30, 1024  ;;  %p1466_p8 = scmp.lt.s32.totalorder %s76_s30, %s76_s30 }
  0x4c   :  { %p1462_p7 = scmp.ne.s32.totalorder %s76_s30, %s1461_s24  ;;  %p1467_p9 = scmp.lt.s32.totalorder %s1461_s24, %s1461_s24 }
  0x4e   :  { %p1468_p10 = por %p1467_p9, %p1466_p8 }
  0x50   :  { %p1469_p11 = pnand %p1468_p10, %p1462_p7 }
  0x52   :  { %1472 = shalt.err (!%p1469_p11)
}
  0x53   :  { %81 = dma.hbm_to_vmem [thread:$0]  %s1699_s7, 1024, %s76_s30, [#allocation9], %s1504_s19, %s1504_s19, %s1505_s20  }
  0x54   :  { %1495 = dma.done.wait [#allocation3], 896  }
  0x55   :  { %1496 = vsyncadd [#allocation3], 4294966400 }
  0x56   :  { %1497 = dma.done.wait [#allocation6], 7296  }
  0x57   :  { %1498 = vsyncadd [#allocation6], 4294960000 }
  0x58   :  { %1499 = dma.done.wait [#allocation9], 2048  }
  0x59   :  { %1500 = vsyncadd [#allocation9], 4294965248  ;;  %v1284_v0 = vld [vmem:[#allocation5 + $0x40] sm:$0xff]   ;;  %v1288_v4 = vld [vmem:[#allocation5 + $0x48] sm:$0xff]   ;;  %v1510_v44 = vmov 0.0   ;;  %vm1511_vm0 = vmmov 0  }
  0x5a   :  { %v1285_v1 = vld [vmem:[#allocation5] sm:$0xff]   ;;  %1113 = vmatprep.subr.bf16.mxu0 %v1284_v0  ;;  %v1289_v5 = vld [vmem:[#allocation5 + $0x8] sm:$0xff]   ;;  %v1292_v8 = vld [vmem:[#allocation5 + $0x50] sm:$0xff]   ;;  %vm513_vm1 = vcmask 130048   ;;  %s1512_s11 = smov [#allocation11]  }
  0x5b   :  { %v1286_v2 = vld [vmem:[#allocation5 + $0xc0] sm:$0xff]   ;;  %1114 = vmatpush3.bf16.msra.mxu0 %v1285_v1  ;;  %v1290_v6 = vld [vmem:[#allocation5 + $0xc8] sm:$0xff]   ;;  %v1293_v9 = vld [vmem:[#allocation5 + $0x10] sm:$0xff]   ;;  %s1024_s12 = sshll.u32 %s1512_s11, 4  ;;  %s1025_s12 = int_to_ptr.vmem [resolvable:$true] %s1024_s12 }
  0x5c   :  { %v1287_v3 = vld [vmem:[#allocation5 + $0x80] sm:$0xff]   ;;  %1135 = vmatprep.subr.bf16.mxu1 %v1286_v2  ;;  %1115 = vmatprep.subr.bf16.mxu0 %v1288_v4  ;;  %v1291_v7 = vld [vmem:[#allocation5 + $0x88] sm:$0xff]   ;;  %v1294_v10 = vld [vmem:[#allocation5 + $0xd0] sm:$0xff]   ;;  %p1478_p13 = scmp.lt.s32.totalorder %s1025_s12, %s1025_s12 }
  0x5d   :  { %1136 = vmatpush3.bf16.msra.mxu1 %v1287_v3  ;;  %v1295_v11 = vld [vmem:[#allocation5 + $0x90] sm:$0xff]   ;;  %v1296_v12 = vld [vmem:[#allocation5 + $0x58] sm:$0xff]   ;;  %v1300_v16 = vld [vmem:[#allocation5 + $0x60] sm:$0xff]  }
  0x5e   :  { %1137 = vmatprep.subr.bf16.mxu1 %v1290_v6  ;;  %v1297_v13 = vld [vmem:[#allocation5 + $0x18] sm:$0xff]   ;;  %v1301_v17 = vld [vmem:[#allocation5 + $0x20] sm:$0xff]   ;;  %v1304_v20 = vld [vmem:[#allocation5 + $0x68] sm:$0xff]  }
  0x5f   :  { %1116 = vmatpush3.bf16.msra.mxu0 %v1289_v5  ;;  %v1298_v14 = vld [vmem:[#allocation5 + $0xd8] sm:$0xff]   ;;  %v1302_v18 = vld [vmem:[#allocation5 + $0xe0] sm:$0xff]   ;;  %v1305_v21 = vld [vmem:[#allocation5 + $0x28] sm:$0xff]  }
  0x60   :  { %1117 = vmatprep.subr.bf16.mxu0 %v1292_v8  ;;  %v1299_v15 = vld [vmem:[#allocation5 + $0x98] sm:$0xff]   ;;  %v1303_v19 = vld [vmem:[#allocation5 + $0xa0] sm:$0xff]   ;;  %v1306_v22 = vld [vmem:[#allocation5 + $0xe8] sm:$0xff]  }
  0x61   :  { %1138 = vmatpush3.bf16.msra.mxu1 %v1291_v7  ;;  %v1307_v23 = vld [vmem:[#allocation5 + $0xa8] sm:$0xff]   ;;  %v1308_v24 = vld [vmem:[#allocation5 + $0x70] sm:$0xff]   ;;  %v1312_v28 = vld [vmem:[#allocation5 + $0x78] sm:$0xff]  }
  0x62   :  { %1139 = vmatprep.subr.bf16.mxu1 %v1294_v10  ;;  %v1309_v25 = vld [vmem:[#allocation5 + $0x30] sm:$0xff]   ;;  %v1313_v29 = vld [vmem:[#allocation5 + $0x38] sm:$0xff]   ;;  %v100_v34 = vld [vmem:[#allocation2] sm:$0xff] }
  0x63   :  { %1118 = vmatpush3.bf16.msra.mxu0 %v1293_v9  ;;  %v1310_v26 = vld [vmem:[#allocation5 + $0xf0] sm:$0xff]   ;;  %v1314_v30 = vld [vmem:[#allocation5 + $0xf8] sm:$0xff]   ;;  %v107_v35 = vpack.c.bf16 %v100_v34, %v100_v34  ;;  %v1316_v36 = vld [vmem:[#allocation5 + $0x140] sm:$0xff]  }
  0x64   :  { %1119 = vmatprep.subr.bf16.mxu0 %v1296_v12  ;;  %v1311_v27 = vld [vmem:[#allocation5 + $0xb0] sm:$0xff]   ;;  %v1315_v33 = vld [vmem:[#allocation5 + $0xb8] sm:$0xff]   ;;  %v103_v37 = vld [vmem:[#allocation2 + $0x18] sm:$0xff] }
  0x65   :  { %1140 = vmatpush3.bf16.msra.mxu1 %v1295_v11  ;;  %v101_v31 = vld [vmem:[#allocation2 + $0x8] sm:$0xff]  ;;  %v110_v38 = vpack.c.bf16 %v103_v37, %v103_v37  ;;  %v1317_v39 = vld [vmem:[#allocation5 + $0x100] sm:$0xff]   ;;  %v102_v40 = vld [vmem:[#allocation2 + $0x10] sm:$0xff] }
  0x66   :  { %1141 = vmatprep.subr.bf16.mxu1 %v1298_v14  ;;  %v108_v32 = vpack.c.bf16 %v101_v31, %v101_v31  ;;  %v109_v41 = vpack.c.bf16 %v102_v40, %v102_v40  ;;  %v1318_v42 = vld [vmem:[#allocation5 + $0x148] sm:$0xff]   ;;  %v1320_v45 = vld [vmem:[#allocation5 + $0x150] sm:$0xff]   ;;  %v1322_v47 = vld [vmem:[#allocation5 + $0x158] sm:$0xff]  }
  0x67   :  { %1120 = vmatpush3.bf16.msra.mxu0 %v1297_v13  ;;  %589 = vmatprep.mubr.bf16.mxu1 %v110_v38  ;;  %v1319_v43 = vld [vmem:[#allocation5 + $0x108] sm:$0xff]   ;;  %v1321_v46 = vld [vmem:[#allocation5 + $0x110] sm:$0xff]   ;;  %v1323_v48 = vld [vmem:[#allocation5 + $0x118] sm:$0xff]  }
  0x68   :  { %1121 = vmatprep.subr.bf16.mxu0 %v1300_v16  ;;  %549 = vmatprep.mubr.bf16.mxu0 %v108_v32  ;;  %v1324_v49 = vld [vmem:[#allocation5 + $0x160] sm:$0xff]   ;;  %v1326_v51 = vld [vmem:[#allocation5 + $0x168] sm:$0xff]   ;;  %v105_v54 = vld [vmem:[#allocation2 + $0x28] sm:$0xff] }
  0x69   :  { %1142 = vmatpush3.bf16.msra.mxu1 %v1299_v15  ;;  %v1325_v50 = vld [vmem:[#allocation5 + $0x120] sm:$0xff]   ;;  %v1327_v52 = vld [vmem:[#allocation5 + $0x128] sm:$0xff]   ;;  %v1328_v55 = vld [vmem:[#allocation5 + $0x170] sm:$0xff]   ;;  %v112_v56 = vpack.c.bf16 %v105_v54, %v105_v54 }
  0x6a   :  { %1143 = vmatprep.subr.bf16.mxu1 %v1302_v18  ;;  %v1332_v53 = vld [vmem:[#allocation5 + $0x180] sm:$0xff]   ;;  %v106_v57 = vld [vmem:[#allocation2 + $0x30] sm:$0xff]  ;;  %v1329_v59 = vld [vmem:[#allocation5 + $0x130] sm:$0xff]  }
  0x6b   :  { %1122 = vmatpush3.bf16.msra.mxu0 %v1301_v17  ;;  %v113_v58 = vpack.c.bf16 %v106_v57, %v106_v57  ;;  %v1330_v60 = vld [vmem:[#allocation5 + $0x178] sm:$0xff]   ;;  %v104_v62 = vld [vmem:[#allocation2 + $0x20] sm:$0xff]  ;;  %v1334_v1 = vld [vmem:[#allocation7 + $0x8] sm:$0xff]  }
  0x6c   :  { %1123 = vmatprep.subr.bf16.mxu0 %v1304_v20  ;;  %v1331_v61 = vld [vmem:[#allocation5 + $0x138] sm:$0xff]   ;;  %v111_v63 = vpack.c.bf16 %v104_v62, %v104_v62  ;;  %v1333_v0 = vld [vmem:[#allocation7] sm:$0xff]   ;;  %v1336_v3 = vld [vmem:[#allocation7 + $0x18] sm:$0xff]  }
  0x6d   :  { %1144 = vmatpush3.bf16.msra.mxu1 %v1303_v19  ;;  %v1335_v2 = vld [vmem:[#allocation7 + $0x10] sm:$0xff]   ;;  %v1337_v4 = vld [vmem:[#allocation7 + $0x20] sm:$0xff]   ;;  %v1338_v5 = vld [vmem:[#allocation7 + $0x28] sm:$0xff]  }
  0x6e   :  { %1145 = vmatprep.subr.bf16.mxu1 %v1306_v22  ;;  %v1339_v6 = vld [vmem:[#allocation7 + $0x30] sm:$0xff]   ;;  %v1340_v7 = vld [vmem:[#allocation7 + $0x38] sm:$0xff]   ;;  %v1341_v8 = vld [vmem:[#allocation8] sm:$0xff]  }
  0x6f   :  { %1124 = vmatpush3.bf16.msra.mxu0 %v1305_v21  ;;  %v1342_v9 = vld [vmem:[#allocation8 + $0x8] sm:$0xff]   ;;  %v1343_v10 = vld [vmem:[#allocation8 + $0x10] sm:$0xff]   ;;  %v1344_v11 = vld [vmem:[#allocation8 + $0x18] sm:$0xff]  }
  0x70   :  { %1125 = vmatprep.subr.bf16.mxu0 %v1308_v24  ;;  %v1035_v13 = vld [vmem:[%s1694_s2] ss:$0 sm:$0xff]  ;;  %v1347_v40 = vld [vmem:[#allocation8 + $0x30] sm:$0xff]  }
  0x71   :  { %1146 = vmatpush3.bf16.msra.mxu1 %v1307_v23  ;;  %v1345_v38 = vld [vmem:[#allocation8 + $0x20] sm:$0xff]   ;;  %v1355_v57 = vld [vmem:[#allocation10 + $0x30] sm:$0xff]  }
  0x72   :  { %1147 = vmatprep.subr.bf16.mxu1 %v1310_v26 }
  0x73   :  { %1126 = vmatpush3.bf16.msra.mxu0 %v1309_v25 }
  0x74   :  { %1127 = vmatprep.subr.bf16.mxu0 %v1312_v28 }
  0x75   :  { %1148 = vmatpush3.bf16.msra.mxu1 %v1311_v27 }
  0x76   :  { %1149 = vmatprep.subr.bf16.mxu1 %v1314_v30 }
  0x77   :  { %1128 = vmatpush3.bf16.msra.mxu0 %v1313_v29 }
  0x78   :  { %1157 = vmatprep.subr.bf16.mxu0 %v1316_v36 }
  0x79   :  { %1150 = vmatpush3.bf16.msra.mxu1 %v1315_v33 }
  0x7a   :  { %550 = vmatmul.mubr.bf16.vlgmr.msra.gmra.mrb[0].mxu0 %v107_v35  ;;  %1208 = vmatprep.subr.bf16.mxu1 %v1510_v44 }
  0x7b   :  { %1158 = vmatpush3.bf16.msra.mxu0 %v1317_v39  ;;  %629 = vmatprep.mubr.bf16.mxu0 %v112_v56  ;;  %v1346_v39 = vld [vmem:[#allocation8 + $0x28] sm:$0xff]  }
  0x7c   :  { %590 = vmatmul.mubr.bf16.vlgmr.msra.gmra.mrb[0].mxu1 %v109_v41  ;;  %1159 = vmatprep.subr.bf16.mxu0 %v1318_v42  ;;  %v1348_v41 = vld [vmem:[#allocation8 + $0x38] sm:$0xff]   ;;  %v1349_v42 = vld [vmem:[#allocation10] sm:$0xff]   ;;  %v1354_v56 = vld [vmem:[#allocation10 + $0x28] sm:$0xff]  }
  0x7d   :  { %1210 = vmatprep.mubr.msk.bf16.mxu1 %vm1511_vm0, %v1510_v44  ;;  %1209 = vmatpush3.bf16.msra.mxu1 %v1332_v53 }
  0x7e   :  { %1214 = vmatprep.subr.bf16.mxu1 %v1510_v44 }
  0x7f   :  { %1160 = vmatpush3.bf16.msra.mxu0 %v1319_v43  ;;  %v1350_v43 = vld [vmem:[#allocation10 + $0x8] sm:$0xff]  }
  0x80   :  { %1161 = vmatprep.subr.bf16.mxu0 %v1320_v45  ;;  %v1351_v45 = vld [vmem:[#allocation10 + $0x10] sm:$0xff]  }
  0x83   :  { %1162 = vmatpush3.bf16.msra.mxu0 %v1321_v46  ;;  %v1352_v46 = vld [vmem:[#allocation10 + $0x18] sm:$0xff]  }
  0x84   :  { %1163 = vmatprep.subr.bf16.mxu0 %v1322_v47  ;;  %1211 = vmatmul.mubr.msk.bf16.vlgmr.msra.gmra.mrb[4].mxu1 %vm513_vm1, %v113_v58  ;;  %v1086_v47 = vld [vmem:[%s1696_s4] ss:$0 sm:$0xff]  ;;  %v1356_v58 = vld [vmem:[#allocation10 + $0x38] sm:$0xff]  }
  0x85   :  { %1230 = vmatprep.mubr.msk.bf16.mxu1 %vm1511_vm0, %v1510_v44  ;;  %1215 = vmatpush3.bf16.msra.mxu1 %v1333_v0 }
  0x86   :  { %1216 = vmatprep.subr.bf16.mxu1 %v1510_v44 }
  0x87   :  { %1164 = vmatpush3.bf16.msra.mxu0 %v1323_v48 }
  0x88   :  { %1165 = vmatprep.subr.bf16.mxu0 %v1324_v49 }
  0x89   :  { %1217 = vmatpush3.bf16.msra.mxu1 %v1334_v1 }
  0x8a   :  { %1218 = vmatprep.subr.bf16.mxu1 %v1510_v44 }
  0x8b   :  { %1166 = vmatpush3.bf16.msra.mxu0 %v1325_v50 }
  0x8c   :  { %1167 = vmatprep.subr.bf16.mxu0 %v1326_v51 }
  0x8d   :  { %1219 = vmatpush3.bf16.msra.mxu1 %v1335_v2 }
  0x8e   :  { %1220 = vmatprep.subr.bf16.mxu1 %v1510_v44 }
  0x8f   :  { %1168 = vmatpush3.bf16.msra.mxu0 %v1327_v52 }
  0x90   :  { %1169 = vmatprep.subr.bf16.mxu0 %v1328_v55  ;;  %v1353_v55 = vld [vmem:[#allocation10 + $0x20] sm:$0xff]  }
  0x91   :  { %1221 = vmatpush3.bf16.msra.mxu1 %v1336_v3  ;;  %v1104_v3 = vld [vmem:[%s1700_s8] ss:$0 sm:$0xff] }
  0x92   :  { %1222 = vmatprep.subr.bf16.mxu1 %v1510_v44 }
  0x93   :  { %1170 = vmatpush3.bf16.msra.mxu0 %v1329_v59  ;;  %v1095_v59 = vld [vmem:[%s1698_s6] ss:$0 sm:$0xff]  ;;  %s1473_s6 = scalar_lea.vmem %s1025_s12, 64 }
  0x94   :  { %1171 = vmatprep.subr.bf16.mxu0 %v1330_v60  ;;  %p1474_p12 = scmp.ne.s32.totalorder %s1025_s12, %s1473_s6  ;;  %p1479_p0 = scmp.lt.s32.totalorder %s1473_s6, %s1473_s6 }
  0x95   :  { %1223 = vmatpush3.bf16.msra.mxu1 %v1337_v4 }
  0x96   :  { %1224 = vmatprep.subr.bf16.mxu1 %v1510_v44  ;;  %p1480_p1 = por %p1479_p0, %p1478_p13 }
  0x97   :  { %1172 = vmatpush3.bf16.msra.mxu0 %v1331_v61 }
  0x98   :  { %1234 = vmatprep.subr.bf16.mxu0 %v1510_v44  ;;  %p1481_p2 = pnand %p1480_p1, %p1474_p12 }
  0x99   :  { %1225 = vmatpush3.bf16.msra.mxu1 %v1338_v5 }
  0x9a   :  { %630 = vmatmul.mubr.bf16.vlgmr.msra.gmra.mrb[4].mxu0 %v111_v63  ;;  %1226 = vmatprep.subr.bf16.mxu1 %v1510_v44 }
  0x9b   :  { %1250 = vmatprep.mubr.msk.bf16.mxu0 %vm1511_vm0, %v1510_v44  ;;  %1235 = vmatpush3.bf16.msra.mxu0 %v1341_v8 }
  0x9c   :  { %1236 = vmatprep.subr.bf16.mxu0 %v1510_v44 }
  0x9d   :  { %1227 = vmatpush3.bf16.msra.mxu1 %v1339_v6 }
  0x9e   :  { %1228 = vmatprep.subr.bf16.mxu1 %v1510_v44 }
  0x9f   :  { %1237 = vmatpush3.bf16.msra.mxu0 %v1342_v9 }
  0xa0   :  { %1238 = vmatprep.subr.bf16.mxu0 %v1510_v44 }
  0xa1   :  { %1229 = vmatpush3.bf16.msra.mxu1 %v1340_v7 }
  0xa2   :  { %1254 = vmatprep.subr.bf16.mxu1 %v1510_v44 }
  0xa3   :  { %1239 = vmatpush3.bf16.msra.mxu0 %v1343_v10 }
  0xa4   :  { %1240 = vmatprep.subr.bf16.mxu0 %v1510_v44 }
  0xa7   :  { %1241 = vmatpush3.bf16.msra.mxu0 %v1344_v11 }
  0xa8   :  { %1242 = vmatprep.subr.bf16.mxu0 %v1510_v44 }
  0xab   :  { %1243 = vmatpush3.bf16.msra.mxu0 %v1345_v38 }
  0xac   :  { %1244 = vmatprep.subr.bf16.mxu0 %v1510_v44 }
  0xaf   :  { %1245 = vmatpush3.bf16.msra.mxu0 %v1346_v39 }
  0xb0   :  { %1246 = vmatprep.subr.bf16.mxu0 %v1510_v44 }
  0xb3   :  { %1247 = vmatpush3.bf16.msra.mxu0 %v1347_v40 }
  0xb4   :  { %1248 = vmatprep.subr.bf16.mxu0 %v1510_v44 }
  0xb7   :  { %1249 = vmatpush3.bf16.msra.mxu0 %v1348_v41 }
 0x14d   :  { %v1129_v12 = vpop.f32.mrb[0].mxu0 }
 0x14e   :  { %v1130_v14 = vpop.f32.mrb[1].mxu0 }
 0x14f   :  { %v1131_v15 = vadd.f32 %v1130_v14, %v1129_v12  ;;  %v1132_v16 = vpop.f32.mrb[2].mxu0  ;;  %v1151_v17 = vpop.f32.mrb[0].mxu1 }
 0x150   :  { %v1133_v18 = vpop.f32.mrb[3].mxu0  ;;  %v1152_v20 = vpop.f32.mrb[1].mxu1 }
 0x151   :  { %v552_v19 = vadd.f32 %v1131_v15, %v1035_v13  ;;  %v1153_v21 = vadd.f32 %v1152_v20, %v1151_v17  ;;  %v1154_v22 = vpop.f32.mrb[2].mxu1 }
 0x152   :  { %v1155_v23 = vpop.f32.mrb[3].mxu1 }
 0x153   :  { %v592_v24 = vadd.f32 %v1153_v21, %v552_v19 }
 0x157   :  { %v671_v25 = vpop.f32.mrb[4].mxu1 }
 0x158   :  { %v1212_v26 = vpop.f32.mrb[5].mxu1 }
 0x159   :  { %v674_v27 = vpop.f32.mrb[6].mxu1 }
 0x15a   :  { %v1213_v28 = vpop.f32.mrb[7].mxu1 }
 0x16d   :  { %v1173_v29 = vpop.f32.mrb[4].mxu0 }
 0x16e   :  { %v1174_v30 = vpop.f32.mrb[5].mxu0 }
 0x16f   :  { %v1175_v31 = vadd.f32 %v1174_v30, %v1173_v29  ;;  %v1176_v32 = vpop.f32.mrb[6].mxu0 }
 0x170   :  { %v1177_v33 = vpop.f32.mrb[7].mxu0 }
 0x171   :  { %v632_v34 = vadd.f32 %v1175_v31, %v592_v24 }
 0x173   :  { %v672_v35 = vadd.f32 %v671_v25, %v632_v34 }
 0x175   :  { %1357 = vtanh.f32 %v672_v35 }
 0x17f   :  { %v1358_v36 = vpop.eup %1357 }
 0x180   :  { %v678_v37 = vpack.c.bf16 %v1358_v36, %v1358_v36 }
 0x182   :  { %1231 = vmatmul.mubr.bf16.vlgmr.msra.gmra.mrb[8].mxu1 %v678_v37 }
 0x183   :  { %1270 = vmatprep.mubr.msk.bf16.mxu1 %vm1511_vm0, %v1510_v44  ;;  %1255 = vmatpush3.bf16.msra.mxu1 %v1349_v42 }
 0x184   :  { %1256 = vmatprep.subr.bf16.mxu1 %v1510_v44 }
 0x187   :  { %1257 = vmatpush3.bf16.msra.mxu1 %v1350_v43 }
 0x188   :  { %1258 = vmatprep.subr.bf16.mxu1 %v1510_v44 }
 0x18b   :  { %1259 = vmatpush3.bf16.msra.mxu1 %v1351_v45 }
 0x18c   :  { %1260 = vmatprep.subr.bf16.mxu1 %v1510_v44 }
 0x18f   :  { %1261 = vmatpush3.bf16.msra.mxu1 %v1352_v46 }
 0x190   :  { %1262 = vmatprep.subr.bf16.mxu1 %v1510_v44 }
 0x193   :  { %1263 = vmatpush3.bf16.msra.mxu1 %v1353_v55 }
 0x194   :  { %1264 = vmatprep.subr.bf16.mxu1 %v1510_v44 }
 0x197   :  { %1265 = vmatpush3.bf16.msra.mxu1 %v1354_v56 }
 0x198   :  { %1266 = vmatprep.subr.bf16.mxu1 %v1510_v44 }
 0x19b   :  { %1267 = vmatpush3.bf16.msra.mxu1 %v1355_v57 }
 0x19c   :  { %1268 = vmatprep.subr.bf16.mxu1 %v1510_v44 }
 0x19f   :  { %1269 = vmatpush3.bf16.msra.mxu1 %v1356_v58 }
 0x255   :  { %v784_v48 = vpop.f32.mrb[8].mxu1 }
 0x256   :  { %v785_v49 = vadd.f32 %v1086_v47, %v784_v48  ;;  %v1232_v50 = vpop.f32.mrb[9].mxu1 }
 0x257   :  { %v787_v51 = vpop.f32.mrb[10].mxu1 }
 0x258   :  { %1359 = vtanh.f32 %v785_v49  ;;  %v1233_v52 = vpop.f32.mrb[11].mxu1 }
 0x262   :  { %v1360_v53 = vpop.eup %1359 }
 0x263   :  { %v791_v54 = vpack.c.bf16 %v1360_v53, %v1360_v53 }
 0x265   :  { %1251 = vmatmul.mubr.bf16.vlgmr.msra.gmra.mrb[8].mxu0 %v791_v54 }
 0x338   :  { %v897_v60 = vpop.f32.mrb[8].mxu0 }
 0x339   :  { %v898_v61 = vadd.f32 %v1095_v59, %v897_v60  ;;  %v1252_v62 = vpop.f32.mrb[9].mxu0 }
 0x33a   :  { %v900_v63 = vpop.f32.mrb[10].mxu0 }
 0x33b   :  { %1361 = vtanh.f32 %v898_v61  ;;  %v1253_v0 = vpop.f32.mrb[11].mxu0 }
 0x345   :  { %v1362_v1 = vpop.eup %1361 }
 0x346   :  { %v904_v2 = vpack.c.bf16 %v1362_v1, %v1362_v1 }
 0x348   :  { %1271 = vmatmul.mubr.bf16.vlgmr.msra.gmra.mrb[12].mxu1 %v904_v2 }
 0x41b   :  { %v1010_v44 = vpop.f32.mrb[12].mxu1 }
 0x41c   :  { %v1011_v4 = vadd.f32 %v1104_v3, %v1010_v44  ;;  %v1272_v5 = vpop.f32.mrb[13].mxu1 }
 0x41d   :  { %v1013_v6 = vpop.f32.mrb[14].mxu1 }
 0x41e   :  { %v1016_v7 = vpack.c.bf16 %v1011_v4, %v1011_v4  ;;  %v1273_v8 = vpop.f32.mrb[15].mxu1 }
 0x420   :  { %1017 = vst [vmem:[#allocation11] sm:$0xf] %v1016_v7 }
 0x421   :  { %1484 = shalt.err (!%p1481_p2)
}
 0x422   :  { %s1485_s8 = scalar_lea.hbm %s1701_s9, 64 }
 0x423   :  { %p1486_p3 = scmp.ne.s32.totalorder %s1701_s9, %s1485_s8  ;;  %p1489_p4 = scmp.lt.u32.totalorder %s1485_s8, %s1701_s9 }
 0x425   :  { %p1491_p5 = pnand %p1489_p4, %p1486_p3 }
 0x427   :  { %1494 = shalt.err (!%p1491_p5)
}
 0x428   :  { %1027 = dma.vmem_to_hbm [thread:$0]  %s1025_s12, 64, %s1701_s9, [#allocation4]  }
 0x429   :  { %1501 = dma.done.wait [#allocation4], 64  }
 0x42a   :  { %1502 = vsyncadd [#allocation4], 4294967232 }
 0x42b   :  { %1031 = vsyncpa [#allocation3], 1 }
 0x42c   :  { %1032 = vsyncpa [#allocation6], 1 }
 0x42d   :  { %1033 = vsyncpa [#allocation9], 1 }
 0x42e   :  { %1034 = vsyncpa [#allocation4], 1 }

</bundles_post_ra>
